<compile_context>
chip_gen: v7x
topology: tpu7x:2x2x1
jax: 0.10.0
libtpu: 0.0.40
codegen_flags: <defaults>
</compile_context>

<pallas_src>
import jax
import jax.numpy as jnp
import numpy as np
from jax.experimental import pallas as pl
from jax.experimental.pallas import tpu as pltpu
from jax.scipy.linalg import block_diag

# ---- model hyper-parameters (small but structurally faithful) ----
B = 2               # batch
NB = 4              # n_branches
T = 128             # TIME_DIM = LFP_SEGMENT_END_MS - LFP_SEGMENT_START_MS (synthetic)
K = 64              # temporal conv kernel width
C1 = 32             # temporal conv out channels
C2 = 64             # depthwise conv out channels
CF = 128            # fusion conv out channels
OUT = 3             # outputSize
OUT_PAD = 128       # lane-dense padded output width (wrapper slices back to OUT)
T_OUT = T - K + 1   # 65
T_OUT_P = ((T_OUT + 7) // 8) * 8   # 72  sublane-aligned time rows (padding is zero)
L = T_OUT // 2      # 32  (AvgPool2d([1,2], stride 2))
EPS = 1e-5

K2 = 2 * K          # 128  im2col lanes per branch (2 H-channels x K taps)
C12 = 2 * C1        # 64   lanes per branch after the temporal conv


def _elu(v):
    return jnp.where(v > 0, v, jnp.exp(jnp.minimum(v, 0.0)) - 1.0)


# ------------------------------ Pallas kernel ------------------------------
def _eegnet_kernel(xc_ref, wt_ref, bt_ref, wd_ref, bd_ref, pool_ref,
                   wf_ref, bf_ref, gp_ref, wl_ref, bl_ref, out_ref):
    # temporal conv (all branches, both H channels) + BN1 + ELU : one bf16 MXU matmul
    a1 = _elu(jnp.dot(xc_ref[...], wt_ref[...],
                      preferred_element_type=jnp.float32) + bt_ref[...])      # (T_OUT_P, NB*2*C1)
    # depthwise conv + BN2 + ELU : block-diagonal (256, 256) matmul
    a2 = _elu(jnp.dot(a1.astype(jnp.bfloat16), wd_ref[...],
                      preferred_element_type=jnp.float32) + bd_ref[...])      # (T_OUT_P, NB*C2)
    # AvgPool2d([1, 2], stride 2) over time : left-matmul by the 0.5-valued pooling matrix
    pooled = jnp.dot(pool_ref[...], a2.astype(jnp.bfloat16),
                     preferred_element_type=jnp.float32)                      # (L, NB*C2)
    # fusion conv (cross-branch sum inside the contraction) + BNf + ELU
    f = _elu(jnp.dot(pooled.astype(jnp.bfloat16), wf_ref[...],
                     preferred_element_type=jnp.float32) + bf_ref[...])       # (L, CF)
    # AdaptiveAvgPool2d((1, 2)) over the L time steps : one segment-mean matmul -> rows (g0, g1)
    g = jnp.dot(gp_ref[...], f.astype(jnp.bfloat16),
                preferred_element_type=jnp.float32)                           # (2, CF)
    # linear; Wl pre-split into its g0/g1 halves (no lane concat), lane-padded to 128 cols
    out = (jnp.dot(g[0:1].astype(jnp.bfloat16), wl_ref[0],
                   preferred_element_type=jnp.float32)
           + jnp.dot(g[1:2].astype(jnp.bfloat16), wl_ref[1],
                     preferred_element_type=jnp.float32)
           + bl_ref[...])                                                     # (1, OUT_PAD)
    out_ref[...] = out.reshape(1, 1, OUT_PAD).astype(out_ref.dtype)


def _im2col(x):
    """(B, NB, 2, T) -> (B*T_OUT_P, NB*2*K) bf16; row = b*T_OUT_P + t', lane = (nb, h, k).
    Wrapper-side layout plumbing (gather) so the temporal conv is a single MXU matmul."""
    x = x.astype(jnp.bfloat16)
    idx = jnp.arange(T_OUT)[:, None] + jnp.arange(K)[None, :]          # (T_OUT, K)
    xw = x[:, :, :, idx]                                               # (B, NB, 2, T_OUT, K)
    xw = jnp.transpose(xw, (0, 3, 1, 2, 4)).reshape(B, T_OUT, NB * K2)
    pad = jnp.zeros((B, T_OUT_P - T_OUT, NB * K2), jnp.bfloat16)
    return jnp.concatenate([xw, pad], axis=1).reshape(B * T_OUT_P, NB * K2)


def multibranch_eegnet(x, folded):
    """x: (B, NB, 2, T) float32, same NCHW convention as the PyTorch input."""
    wt, bt, wd, bd, pool, wf, bf, gp, wl, bl = folded
    xc = _im2col(x)
    out = pl.pallas_call(
        _eegnet_kernel,
        out_shape=jax.ShapeDtypeStruct((B, 1, OUT_PAD), jnp.float32),
        grid_spec=pltpu.PrefetchScalarGridSpec(
            num_scalar_prefetch=0,
            grid=(B,),                                                # parallel batch axis
            in_specs=[
                pl.BlockSpec((T_OUT_P, NB * K2), lambda b: (b, 0)),   # im2col'd input (per batch)
                pl.BlockSpec((NB * K2, NB * C12), lambda b: (0, 0)),  # temporal W (block-diag, BN1 folded)
                pl.BlockSpec((1, NB * C12), lambda b: (0, 0)),        # temporal bias (f32)
                pl.BlockSpec((NB * C12, NB * C2), lambda b: (0, 0)),  # depthwise W (block-diag, BN2 folded)
                pl.BlockSpec((1, NB * C2), lambda b: (0, 0)),         # depthwise bias (f32)
                pl.BlockSpec((L, T_OUT_P), lambda b: (0, 0)),         # avg-pool matrix
                pl.BlockSpec((NB * C2, CF), lambda b: (0, 0)),        # fusion W (row-stacked, BNf folded)
                pl.BlockSpec((1, CF), lambda b: (0, 0)),              # fusion bias (f32)
                pl.BlockSpec((2, L), lambda b: (0, 0)),               # adaptive-pool matrix
                pl.BlockSpec((2, CF, OUT_PAD), lambda b: (0, 0, 0)),  # linear W halves (lane-padded)
                pl.BlockSpec((1, OUT_PAD), lambda b: (0, 0)),         # linear bias (f32, lane-padded)
            ],
            out_specs=pl.BlockSpec((1, 1, OUT_PAD), lambda b: (b, 0, 0)),
        ),
        compiler_params=pltpu.CompilerParams(
            dimension_semantics=("parallel",)),
    )(xc, wt, bt, wd, bd, pool, wf, bf, gp, wl, bl)
    return out[:, 0, :OUT]


multibranch_eegnet_jit = jax.jit(multibranch_eegnet)


# --------------------------- parameters (glue) ---------------------------
def init_params(key):
    ks = iter(jax.random.split(key, 128))

    def nrm(shape, s=0.1):
        return s * jax.random.normal(next(ks), shape, dtype=jnp.float32)

    def uni(shape, lo, hi):
        return jax.random.uniform(next(ks), shape, jnp.float32, lo, hi)

    branches = []
    for _ in range(NB):
        branches.append(dict(
            W1=nrm((C1, 1, 1, K)), b1=nrm((C1,)),
            g1=1.0 + nrm((C1,)), be1=nrm((C1,)), m1=nrm((C1,)), v1=uni((C1,), 0.5, 1.5),
            W2=nrm((C2, C1, 2, 1)), b2=nrm((C2,)),
            g2=1.0 + nrm((C2,)), be2=nrm((C2,)), m2=nrm((C2,)), v2=uni((C2,), 0.5, 1.5),
        ))
    fusion = dict(
        Wf=nrm((CF, C2, NB, 1)), bf=nrm((CF,)),
        gF=1.0 + nrm((CF,)), beF=nrm((CF,)), mF=nrm((CF,)), vF=uni((CF,), 0.5, 1.5),
    )
    linear = dict(Wl=nrm((OUT, 2 * CF)), bl=nrm((OUT,)))
    return branches, fusion, linear


def fold_params(branches, fusion, linear):
    """Fold eval-mode BatchNorms into conv weights/biases (in f32) and build the
    branch-batched block matrices consumed by the kernel; matmul operands are
    emitted in bfloat16, biases stay float32."""
    sF = fusion["gF"] / jnp.sqrt(fusion["vF"] + EPS)

    wt_blocks, bt_parts, wd_blocks, bd_parts, wf_parts = [], [], [], [], []
    for i, br in enumerate(branches):
        s1 = br["g1"] / jnp.sqrt(br["v1"] + EPS)
        w1 = (br["W1"][:, 0, 0, :] * s1[:, None]).T                  # (K, C1)  [k, c1]
        b1 = (br["b1"] - br["m1"]) * s1 + br["be1"]                  # (C1,)
        wt_blocks.append(block_diag(w1, w1))                         # (2K, 2C1): per-H diag
        bt_parts.append(jnp.concatenate([b1, b1]))                   # (2C1,)

        s2 = br["g2"] / jnp.sqrt(br["v2"] + EPS)
        w2 = jnp.transpose(br["W2"][:, :, :, 0], (2, 1, 0)).reshape(C12, C2) * s2[None, :]
        wd_blocks.append(w2)                                         # (2C1, C2) row q=h*C1+c1
        bd_parts.append((br["b2"] - br["m2"]) * s2 + br["be2"])      # (C2,)

        wf_parts.append(fusion["Wf"][:, :, i, 0].T * sF[None, :])    # (C2, CF)

    wt = block_diag(*wt_blocks).astype(jnp.bfloat16)                 # (NB*2K, NB*2C1)
    bt = jnp.concatenate(bt_parts)[None, :]                          # (1, NB*2C1) f32
    wd = block_diag(*wd_blocks).astype(jnp.bfloat16)                 # (NB*2C1, NB*C2)
    bd = jnp.concatenate(bd_parts)[None, :]                          # (1, NB*C2) f32
    wf = jnp.concatenate(wf_parts, axis=0).astype(jnp.bfloat16)      # (NB*C2, CF) row-stacked
    bf = ((fusion["bf"] - fusion["mF"]) * sF + fusion["beF"])[None, :]   # (1, CF) f32

    # AvgPool2d([1, 2], stride 2) over time as a left matmul (per batch item).
    # Drops the odd 65th sample; zero columns also kill the zero-padded t' >= T_OUT rows
    # (which carry ELU(bias) != 0) -- do not reorder this masking with the fusion step.
    pool = np.zeros((L, T_OUT_P), np.float32)
    for l in range(L):
        pool[l, 2 * l] = 0.5
        pool[l, 2 * l + 1] = 0.5

    # AdaptiveAvgPool2d((1, 2)) over the L time steps as a 2-row segment-mean matrix.
    e0 = -(-L // 2)
    s1seg = L // 2
    gp = np.zeros((2, L), np.float32)
    gp[0, :e0] = 1.0 / e0
    gp[1, s1seg:] = 1.0 / (L - s1seg)

    # Linear: de-interleave the torch (c, j) .view order into the g0/g1 halves and
    # lane-pad the OUT columns to 128 so the output store is unmasked / lane-dense.
    Wl = np.asarray(linear["Wl"])                                    # (OUT, 2*CF), col = c*2 + j
    wl = np.zeros((2, CF, OUT_PAD), np.float32)
    wl[0, :, :OUT] = Wl[:, 0::2].T
    wl[1, :, :OUT] = Wl[:, 1::2].T
    bl = np.zeros((1, OUT_PAD), np.float32)
    bl[0, :OUT] = np.asarray(linear["bl"])

    return (wt, bt, wd, bd,
            jnp.asarray(pool, jnp.bfloat16), wf, bf,
            jnp.asarray(gp, jnp.bfloat16),
            jnp.asarray(wl, jnp.bfloat16), jnp.asarray(bl, jnp.float32))


# ------------------------- pure-JAX reference (f32, highest precision) -------------------------
def reference_forward(x, branches, fusion, linear):
    hp = jax.lax.Precision.HIGHEST
    outs = []
    for i, br in enumerate(branches):
        xi = x[:, i, :, :]                                               # (B, 2, T)
        win = jnp.stack([xi[:, :, k:k + T_OUT] for k in range(K)], axis=-1)
        a = jnp.einsum("bhtk,ck->bcht", win, br["W1"][:, 0, 0, :], precision=hp) \
            + br["b1"][None, :, None, None]
        a = (a - br["m1"][None, :, None, None]) / jnp.sqrt(br["v1"] + EPS)[None, :, None, None] \
            * br["g1"][None, :, None, None] + br["be1"][None, :, None, None]
        a = _elu(a)
        d = jnp.einsum("dch,bcht->bdt", br["W2"][:, :, :, 0], a, precision=hp) \
            + br["b2"][None, :, None]
        d = (d - br["m2"][None, :, None]) / jnp.sqrt(br["v2"] + EPS)[None, :, None] \
            * br["g2"][None, :, None] + br["be2"][None, :, None]
        d = _elu(d)
        outs.append(0.5 * (d[:, :, 0:2 * L:2] + d[:, :, 1:2 * L:2]))     # (B, C2, L)
    cat = jnp.stack(outs, axis=2)                                        # (B, C2, NB, L)
    fo = jnp.einsum("ecn,bcnt->bet", fusion["Wf"][:, :, :, 0], cat, precision=hp) \
         + fusion["bf"][None, :, None]
    fo = (fo - fusion["mF"][None, :, None]) / jnp.sqrt(fusion["vF"] + EPS)[None, :, None] \
         * fusion["gF"][None, :, None] + fusion["beF"][None, :, None]
    fo = _elu(fo)                                                        # (B, CF, L)
    e0 = -(-L // 2)
    s1 = L // 2
    g0 = fo[:, :, :e0].mean(axis=-1)
    g1 = fo[:, :, s1:].mean(axis=-1)
    feat = jnp.stack([g0, g1], axis=-1).reshape(x.shape[0], 2 * CF)
    return jnp.dot(feat, linear["Wl"].T, precision=hp) + linear["bl"][None, :]


if __name__ == "__main__":
    key = jax.random.PRNGKey(0)
    pkey, xkey = jax.random.split(key)
    branches, fusion, linear = init_params(pkey)
    folded = fold_params(branches, fusion, linear)

    x = jax.random.normal(xkey, (B, NB, 2, T), dtype=jnp.float32)

    out = multibranch_eegnet_jit(x, folded)
    out = jax.block_until_ready(out)

    ref = reference_forward(x, branches, fusion, linear)
    # bf16 operands with f32 accumulation vs a full-f32 reference: ~1e-2-level deltas expected.
    np.testing.assert_allclose(np.asarray(out), np.asarray(ref), rtol=3e-2, atol=3e-2)
    print("KERNEL_OK")
</pallas_src>

<mosaic_0001>
module attributes {stable_mosaic.version = 11 : i64} {
  func.func @_eegnet_kernel(%arg0: i32, %arg1: memref<72x512xbf16, #tpu.memory_space<vmem>>, %arg2: memref<512x256xbf16, #tpu.memory_space<vmem>>, %arg3: memref<1x256xf32, #tpu.memory_space<vmem>>, %arg4: memref<256x256xbf16, #tpu.memory_space<vmem>>, %arg5: memref<1x256xf32, #tpu.memory_space<vmem>>, %arg6: memref<32x72xbf16, #tpu.memory_space<vmem>>, %arg7: memref<256x128xbf16, #tpu.memory_space<vmem>>, %arg8: memref<1x128xf32, #tpu.memory_space<vmem>>, %arg9: memref<2x32xbf16, #tpu.memory_space<vmem>>, %arg10: memref<2x128x128xbf16, #tpu.memory_space<vmem>>, %arg11: memref<1x128xf32, #tpu.memory_space<vmem>>, %arg12: memref<1x1x128xf32, #tpu.memory_space<vmem>>) attributes {dimension_semantics = [#tpu.dimension_semantics<parallel>], iteration_bounds = array<i64: 2>, scalar_prefetch = 0 : i64, scratch_operands = 0 : i64, tpu.core_type = #tpu.core_type<tc>, window_params = [{transform_indices = @transform_0, window_bounds = array<i64: 72, 512>}, {pipeline_mode = #tpu.pipeline_mode<synchronous>, transform_indices = @transform_1, window_bounds = array<i64: 512, 256>}, {pipeline_mode = #tpu.pipeline_mode<synchronous>, transform_indices = @transform_2, window_bounds = array<i64: 1, 256>}, {pipeline_mode = #tpu.pipeline_mode<synchronous>, transform_indices = @transform_3, window_bounds = array<i64: 256, 256>}, {pipeline_mode = #tpu.pipeline_mode<synchronous>, transform_indices = @transform_4, window_bounds = array<i64: 1, 256>}, {pipeline_mode = #tpu.pipeline_mode<synchronous>, transform_indices = @transform_5, window_bounds = array<i64: 32, 72>}, {pipeline_mode = #tpu.pipeline_mode<synchronous>, transform_indices = @transform_6, window_bounds = array<i64: 256, 128>}, {pipeline_mode = #tpu.pipeline_mode<synchronous>, transform_indices = @transform_7, window_bounds = array<i64: 1, 128>}, {pipeline_mode = #tpu.pipeline_mode<synchronous>, transform_indices = @transform_8, window_bounds = array<i64: 2, 32>}, {pipeline_mode = #tpu.pipeline_mode<synchronous>, transform_indices = @transform_9, window_bounds = array<i64: 2, 128, 128>}, {pipeline_mode = #tpu.pipeline_mode<synchronous>, transform_indices = @transform_10, window_bounds = array<i64: 1, 128>}, {transform_indices = @transform_11, window_bounds = array<i64: 1, 1, 128>}]} {
    %c0 = arith.constant 0 : index
    %c0_0 = arith.constant 0 : index
    %0 = vector.load %arg1[%c0, %c0_0] : memref<72x512xbf16, #tpu.memory_space<vmem>>, vector<72x512xbf16>
    %c0_1 = arith.constant 0 : index
    %c0_2 = arith.constant 0 : index
    %1 = vector.load %arg2[%c0_1, %c0_2] : memref<512x256xbf16, #tpu.memory_space<vmem>>, vector<512x256xbf16>
    %cst = arith.constant dense<0.000000e+00> : vector<72x256xf32>
    %2 = tpu.matmul %0, %1, %cst {dimension_numbers = #tpu.dot_dimension_numbers<[1], [0], [0], [1], [0, 0, 1, 1], [], []>} : vector<72x512xbf16>, vector<512x256xbf16>, vector<72x256xf32> -> vector<72x256xf32>
    %c0_3 = arith.constant 0 : index
    %c0_4 = arith.constant 0 : index
    %3 = vector.load %arg3[%c0_3, %c0_4] : memref<1x256xf32, #tpu.memory_space<vmem>>, vector<1x256xf32>
    %4 = vector.broadcast %3 : vector<1x256xf32> to vector<72x256xf32>
    %5 = arith.addf %2, %4 : vector<72x256xf32>
    %cst_5 = arith.constant 0.000000e+00 : f32
    %6 = vector.broadcast %cst_5 : f32 to vector<72x256xf32>
    %7 = arith.cmpf ogt, %5, %6 : vector<72x256xf32>
    %cst_6 = arith.constant 0.000000e+00 : f32
    %8 = vector.broadcast %cst_6 : f32 to vector<72x256xf32>
    %9 = arith.minimumf %5, %8 : vector<72x256xf32>
    %10 = math.exp %9 : vector<72x256xf32>
    %cst_7 = arith.constant 1.000000e+00 : f32
    %11 = vector.broadcast %cst_7 : f32 to vector<72x256xf32>
    %12 = arith.subf %10, %11 : vector<72x256xf32>
    %13 = arith.select %7, %5, %12 : vector<72x256xi1>, vector<72x256xf32>
    %14 = arith.truncf %13 : vector<72x256xf32> to vector<72x256xbf16>
    %c0_8 = arith.constant 0 : index
    %c0_9 = arith.constant 0 : index
    %15 = vector.load %arg4[%c0_8, %c0_9] : memref<256x256xbf16, #tpu.memory_space<vmem>>, vector<256x256xbf16>
    %cst_10 = arith.constant dense<0.000000e+00> : vector<72x256xf32>
    %16 = tpu.matmul %14, %15, %cst_10 {dimension_numbers = #tpu.dot_dimension_numbers<[1], [0], [0], [1], [0, 0, 1, 1], [], []>} : vector<72x256xbf16>, vector<256x256xbf16>, vector<72x256xf32> -> vector<72x256xf32>
    %c0_11 = arith.constant 0 : index
    %c0_12 = arith.constant 0 : index
    %17 = vector.load %arg5[%c0_11, %c0_12] : memref<1x256xf32, #tpu.memory_space<vmem>>, vector<1x256xf32>
    %18 = vector.broadcast %17 : vector<1x256xf32> to vector<72x256xf32>
    %19 = arith.addf %16, %18 : vector<72x256xf32>
    %cst_13 = arith.constant 0.000000e+00 : f32
    %20 = vector.broadcast %cst_13 : f32 to vector<72x256xf32>
    %21 = arith.cmpf ogt, %19, %20 : vector<72x256xf32>
    %cst_14 = arith.constant 0.000000e+00 : f32
    %22 = vector.broadcast %cst_14 : f32 to vector<72x256xf32>
    %23 = arith.minimumf %19, %22 : vector<72x256xf32>
    %24 = math.exp %23 : vector<72x256xf32>
    %cst_15 = arith.constant 1.000000e+00 : f32
    %25 = vector.broadcast %cst_15 : f32 to vector<72x256xf32>
    %26 = arith.subf %24, %25 : vector<72x256xf32>
    %27 = arith.select %21, %19, %26 : vector<72x256xi1>, vector<72x256xf32>
    %c0_16 = arith.constant 0 : index
    %c0_17 = arith.constant 0 : index
    %28 = vector.load %arg6[%c0_16, %c0_17] : memref<32x72xbf16, #tpu.memory_space<vmem>>, vector<32x72xbf16>
    %29 = arith.truncf %27 : vector<72x256xf32> to vector<72x256xbf16>
    %cst_18 = arith.constant dense<0.000000e+00> : vector<32x256xf32>
    %30 = tpu.matmul %28, %29, %cst_18 {dimension_numbers = #tpu.dot_dimension_numbers<[1], [0], [0], [1], [0, 0, 1, 1], [], []>} : vector<32x72xbf16>, vector<72x256xbf16>, vector<32x256xf32> -> vector<32x256xf32>
    %31 = arith.truncf %30 : vector<32x256xf32> to vector<32x256xbf16>
    %c0_19 = arith.constant 0 : index
    %c0_20 = arith.constant 0 : index
    %32 = vector.load %arg7[%c0_19, %c0_20] : memref<256x128xbf16, #tpu.memory_space<vmem>>, vector<256x128xbf16>
    %cst_21 = arith.constant dense<0.000000e+00> : vector<32x128xf32>
    %33 = tpu.matmul %31, %32, %cst_21 {dimension_numbers = #tpu.dot_dimension_numbers<[1], [0], [0], [1], [0, 0, 1, 1], [], []>} : vector<32x256xbf16>, vector<256x128xbf16>, vector<32x128xf32> -> vector<32x128xf32>
    %c0_22 = arith.constant 0 : index
    %c0_23 = arith.constant 0 : index
    %34 = vector.load %arg8[%c0_22, %c0_23] : memref<1x128xf32, #tpu.memory_space<vmem>>, vector<1x128xf32>
    %35 = vector.broadcast %34 : vector<1x128xf32> to vector<32x128xf32>
    %36 = arith.addf %33, %35 : vector<32x128xf32>
    %cst_24 = arith.constant 0.000000e+00 : f32
    %37 = vector.broadcast %cst_24 : f32 to vector<32x128xf32>
    %38 = arith.cmpf ogt, %36, %37 : vector<32x128xf32>
    %cst_25 = arith.constant 0.000000e+00 : f32
    %39 = vector.broadcast %cst_25 : f32 to vector<32x128xf32>
    %40 = arith.minimumf %36, %39 : vector<32x128xf32>
    %41 = math.exp %40 : vector<32x128xf32>
    %cst_26 = arith.constant 1.000000e+00 : f32
    %42 = vector.broadcast %cst_26 : f32 to vector<32x128xf32>
    %43 = arith.subf %41, %42 : vector<32x128xf32>
    %44 = arith.select %38, %36, %43 : vector<32x128xi1>, vector<32x128xf32>
    %c0_27 = arith.constant 0 : index
    %c0_28 = arith.constant 0 : index
    %45 = vector.load %arg9[%c0_27, %c0_28] : memref<2x32xbf16, #tpu.memory_space<vmem>>, vector<2x32xbf16>
    %46 = arith.truncf %44 : vector<32x128xf32> to vector<32x128xbf16>
    %cst_29 = arith.constant dense<0.000000e+00> : vector<2x128xf32>
    %47 = tpu.matmul %45, %46, %cst_29 {dimension_numbers = #tpu.dot_dimension_numbers<[1], [0], [0], [1], [0, 0, 1, 1], [], []>} : vector<2x32xbf16>, vector<32x128xbf16>, vector<2x128xf32> -> vector<2x128xf32>
    %48 = vector.extract_strided_slice %47 {offsets = [0, 0], sizes = [1, 128], strides = [1, 1]} : vector<2x128xf32> to vector<1x128xf32>
    %49 = arith.truncf %48 : vector<1x128xf32> to vector<1x128xbf16>
    %c0_30 = arith.constant 0 : index
    %c0_31 = arith.constant 0 : index
    %c0_32 = arith.constant 0 : index
    %50 = vector.load %arg10[%c0_30, %c0_31, %c0_32] : memref<2x128x128xbf16, #tpu.memory_space<vmem>>, vector<1x128x128xbf16>
    %51 = vector.shape_cast %50 : vector<1x128x128xbf16> to vector<128x128xbf16>
    %cst_33 = arith.constant dense<0.000000e+00> : vector<1x128xf32>
    %52 = tpu.matmul %49, %51, %cst_33 {dimension_numbers = #tpu.dot_dimension_numbers<[1], [0], [0], [1], [0, 0, 1, 1], [], []>} : vector<1x128xbf16>, vector<128x128xbf16>, vector<1x128xf32> -> vector<1x128xf32>
    %53 = vector.extract_strided_slice %47 {offsets = [1, 0], sizes = [1, 128], strides = [1, 1]} : vector<2x128xf32> to vector<1x128xf32>
    %54 = arith.truncf %53 : vector<1x128xf32> to vector<1x128xbf16>
    %c1 = arith.constant 1 : index
    %c0_34 = arith.constant 0 : index
    %c0_35 = arith.constant 0 : index
    %55 = vector.load %arg10[%c1, %c0_34, %c0_35] : memref<2x128x128xbf16, #tpu.memory_space<vmem>>, vector<1x128x128xbf16>
    %56 = vector.shape_cast %55 : vector<1x128x128xbf16> to vector<128x128xbf16>
    %cst_36 = arith.constant dense<0.000000e+00> : vector<1x128xf32>
    %57 = tpu.matmul %54, %56, %cst_36 {dimension_numbers = #tpu.dot_dimension_numbers<[1], [0], [0], [1], [0, 0, 1, 1], [], []>} : vector<1x128xbf16>, vector<128x128xbf16>, vector<1x128xf32> -> vector<1x128xf32>
    %58 = arith.addf %52, %57 : vector<1x128xf32>
    %c0_37 = arith.constant 0 : index
    %c0_38 = arith.constant 0 : index
    %59 = vector.load %arg11[%c0_37, %c0_38] : memref<1x128xf32, #tpu.memory_space<vmem>>, vector<1x128xf32>
    %60 = arith.addf %58, %59 : vector<1x128xf32>
    %61 = vector.shape_cast %60 : vector<1x128xf32> to vector<1x1x128xf32>
    %c0_39 = arith.constant 0 : index
    %c0_40 = arith.constant 0 : index
    %c0_41 = arith.constant 0 : index
    %62 = vector.load %arg12[%c0_39, %c0_40, %c0_41] : memref<1x1x128xf32, #tpu.memory_space<vmem>>, vector<1x1x128xf32>
    tpu.vector_store %arg12[%c0_39, %c0_40, %c0_41], %61 {strides = array<i32>} : memref<1x1x128xf32, #tpu.memory_space<vmem>>, vector<1x1x128xf32>,
    return
  }
  func.func @transform_0(%arg0: i32) -> (i32, i32) {
    %c0_i32 = arith.constant 0 : i32
    %c0_i32_0 = arith.constant 0 : i32
    return %arg0, %c0_i32 : i32, i32
  }
  func.func @transform_1(%arg0: i32) -> (i32, i32) {
    %c0_i32 = arith.constant 0 : i32
    %c0_i32_0 = arith.constant 0 : i32
    %c0_i32_1 = arith.constant 0 : i32
    return %c0_i32, %c0_i32_0 : i32, i32
  }
  func.func @transform_2(%arg0: i32) -> (i32, i32) {
    %c0_i32 = arith.constant 0 : i32
    %c0_i32_0 = arith.constant 0 : i32
    %c0_i32_1 = arith.constant 0 : i32
    return %c0_i32, %c0_i32_0 : i32, i32
  }
  func.func @transform_3(%arg0: i32) -> (i32, i32) {
    %c0_i32 = arith.constant 0 : i32
    %c0_i32_0 = arith.constant 0 : i32
    %c0_i32_1 = arith.constant 0 : i32
    return %c0_i32, %c0_i32_0 : i32, i32
  }
  func.func @transform_4(%arg0: i32) -> (i32, i32) {
    %c0_i32 = arith.constant 0 : i32
    %c0_i32_0 = arith.constant 0 : i32
    %c0_i32_1 = arith.constant 0 : i32
    return %c0_i32, %c0_i32_0 : i32, i32
  }
  func.func @transform_5(%arg0: i32) -> (i32, i32) {
    %c0_i32 = arith.constant 0 : i32
    %c0_i32_0 = arith.constant 0 : i32
    %c0_i32_1 = arith.constant 0 : i32
    return %c0_i32, %c0_i32_0 : i32, i32
  }
  func.func @transform_6(%arg0: i32) -> (i32, i32) {
    %c0_i32 = arith.constant 0 : i32
    %c0_i32_0 = arith.constant 0 : i32
    %c0_i32_1 = arith.constant 0 : i32
    return %c0_i32, %c0_i32_0 : i32, i32
  }
  func.func @transform_7(%arg0: i32) -> (i32, i32) {
    %c0_i32 = arith.constant 0 : i32
    %c0_i32_0 = arith.constant 0 : i32
    %c0_i32_1 = arith.constant 0 : i32
    return %c0_i32, %c0_i32_0 : i32, i32
  }
  func.func @transform_8(%arg0: i32) -> (i32, i32) {
    %c0_i32 = arith.constant 0 : i32
    %c0_i32_0 = arith.constant 0 : i32
    %c0_i32_1 = arith.constant 0 : i32
    return %c0_i32, %c0_i32_0 : i32, i32
  }
  func.func @transform_9(%arg0: i32) -> (i32, i32, i32) {
    %c0_i32 = arith.constant 0 : i32
    %c0_i32_0 = arith.constant 0 : i32
    %c0_i32_1 = arith.constant 0 : i32
    %c0_i32_2 = arith.constant 0 : i32
    return %c0_i32, %c0_i32_0, %c0_i32_1 : i32, i32, i32
  }
  func.func @transform_10(%arg0: i32) -> (i32, i32) {
    %c0_i32 = arith.constant 0 : i32
    %c0_i32_0 = arith.constant 0 : i32
    %c0_i32_1 = arith.constant 0 : i32
    return %c0_i32, %c0_i32_0 : i32, i32
  }
  func.func @transform_11(%arg0: i32) -> (i32, i32, i32) {
    %c0_i32 = arith.constant 0 : i32
    %c0_i32_0 = arith.constant 0 : i32
    %c0_i32_1 = arith.constant 0 : i32
    return %arg0, %c0_i32, %c0_i32_0 : i32, i32, i32
  }
}

</mosaic_0001>

<bundles_post_ra>
// kernel: multibranch_eegnet.1
= control target key start
LH: loop header
LB: loop body
LE: loop exit
PB: predicated region body
PF: predicated region fallthrough
CT: control target
= control target key end

     0   :  { %16 = vsyncpa [#allocation3], 0  ;;  %s3789_s0 = inlined_call_operand.vmem [shape: bf16[144,512], index: 0, kind: input, shape index: {}]   ;;  %s3790_s1 = inlined_call_operand.vmem [shape: bf16[512,256], index: 1, kind: input, shape index: {}]   ;;  %s3791_s2 = inlined_call_operand.vmem [shape: f32[1,256], index: 2, kind: input, shape index: {}]   ;;  %s3792_s3 = inlined_call_operand.vmem [shape: bf16[256,256], index: 3, kind: input, shape index: {}]   ;;  %s3793_s4 = inlined_call_operand.vmem [shape: f32[1,256], index: 4, kind: input, shape index: {}]   ;;  %s3794_s5 = inlined_call_operand.vmem [shape: bf16[32,72], index: 5, kind: input, shape index: {}]   ;;  %s3795_s6 = inlined_call_operand.vmem [shape: bf16[256,128], index: 6, kind: input, shape index: {}]   ;;  %s3796_s7 = inlined_call_operand.vmem [shape: f32[1,128], index: 7, kind: input, shape index: {}]   ;;  %s3797_s8 = inlined_call_operand.vmem [shape: bf16[2,32], index: 8, kind: input, shape index: {}]   ;;  %s3798_s9 = inlined_call_operand.vmem [shape: bf16[2,128,128], index: 9, kind: input, shape index: {}]   ;;  %s3799_s10 = inlined_call_operand.vmem [shape: f32[1,128], index: 10, kind: input, shape index: {}]   ;;  %s3800_s11 = inlined_call_operand.hbm [shape: f32[2,1,128], index: 11, kind: output, shape index: {}]  }
   0x1   :  { %18 = vsyncpa [#allocation3 + $0x1], 0  ;;  %s3018_s17 = smov 0   ;;  %s3020_s18 = smov 0  }
   0x2   :  { %s3022_s19 = smov 0   ;;  %s3024_s20 = smov 0  }
   0x3 LB: > { %s3039_s21 = sadd.s32 4294967295, %s2952_s20   ;;  %s2206_s22 = sadd.s32 4294967294, %s2952_s20   ;;  %s2952_s20 = sphi %s3024_s20, %s3808_s20   ;;  %s2948_s19 = sphi %s3022_s19, %s3807_s19   ;;  %s2944_s18 = sphi %s3020_s18, %s3806_s18   ;;  %s2940_s17 = sphi %s3018_s17, %s3805_s17  }
   0x4   : > { %s3043_s23 = sadd.s32 1, %s2952_s20   ;;  %s267_s24 = sadd.s32 1, %s2948_s19 }
   0x5   : > { %s264_s25 = ssub.s32 %s2952_s20, %s3043_s23  ;;  %p277_p0 = scmp.ne.s32.totalorder %s2948_s19, %s2944_s18 }
   0x6   : > { %p265_p1 = scmp.eq.s32.totalorder %s264_s25, 0  ;;  %p278_p2 = scmp.eq.s32.totalorder %s3039_s21, 1 }
   0x7   : > { %p283_p3 = scmp.ne.s32.totalorder %s2944_s18, %s2940_s17  ;;  %p284_p4 = scmp.eq.s32.totalorder %s2206_s22, 1 }
   0x8   : > { %s3054_s26 = scalar_select %p265_p1, %s2948_s19, %s267_s24  }
   0x9   : > { %p3056_p5 = por %p278_p2, %p277_p0  ;;  %p3060_p6 = por %p284_p4, %p283_p3 }
   0xa   : > { %3801 = sst [smem:[#allocation5_spill]] %s3054_s26  ;;  %p2209_p7 = scmp.ge.s32.totalorder %s2952_s20, 1 }
   0xb   : > { %p342_p8 = scmp.lt.s32.totalorder %s2952_s20, 3 }
   0xd   : > { %p343_p9 = pnand %p2209_p7, %p342_p8 }
   0xe   : > { %v2604_v0 = vld [vmem:[%s3790_s1 + $0x4] ss:$8 sps:$4 sm:$0xff] (!%p343_p9)   ;;  %v2606_v1 = vld [vmem:[%s3790_s1] ss:$8 sps:$4 sm:$0xff] (!%p343_p9)   ;;  %v2607_v2 = vld [vmem:[%s3790_s1 + $0x14] ss:$8 sps:$4 sm:$0xff] (!%p343_p9)  }
   0xf   : > { %346 = sbr.rel (%p343_p9) target bundleno = 1566 (0x61e), region = 64  ;;  %898 = vmatprep.subr.bf16.mxu0 (!%p343_p9), %v2604_v0  ;;  %v2609_v3 = vld [vmem:[%s3790_s1 + $0x10] ss:$8 sps:$4 sm:$0xff] (!%p343_p9)   ;;  %v2610_v4 = vld [vmem:[%s3790_s1 + $0x24] ss:$8 sps:$4 sm:$0xff] (!%p343_p9)   ;;  %s380_s15 = sand.u32 (!%p343_p9), 1, %s2944_s18  }
  0x10   : > { %899 = vmatpush1.bf16.msra.mxu0 (!%p343_p9), %v2606_v1  ;;  %s382_s29 = smul.u32 (!%p343_p9), 9, %s3039_s21  ;;  %v2612_v5 = vld [vmem:[%s3790_s1 + $0x20] ss:$8 sps:$4 sm:$0xff] (!%p343_p9)   ;;  %v2613_v6 = vld [vmem:[%s3790_s1 + $0x34] ss:$8 sps:$4 sm:$0xff] (!%p343_p9)   ;;  %s381_s16 = scalar_lea.vmem (!%p343_p9), [#allocation2], %s380_s15 }
  0x11   : > { %900 = vmatprep.subr.bf16.mxu0 (!%p343_p9), %v2607_v2  ;;  %v2615_v7 = vld [vmem:[%s3790_s1 + $0x30] ss:$8 sps:$4 sm:$0xff] (!%p343_p9)   ;;  %v2616_v8 = vld [vmem:[%s3790_s1 + $0x44] ss:$8 sps:$4 sm:$0xff] (!%p343_p9)   ;;  %v2618_v9 = vld [vmem:[%s3790_s1 + $0x40] ss:$8 sps:$4 sm:$0xff] (!%p343_p9)  }
  0x12   : > { %p383_p10 = scmp.lt.s32.totalorder (!%p343_p9), %s382_s29, 17  ;;  %v2619_v10 = vld [vmem:[%s3790_s1 + $0x54] ss:$8 sps:$4 sm:$0xff] (!%p343_p9)   ;;  %v2621_v11 = vld [vmem:[%s3790_s1 + $0x50] ss:$8 sps:$4 sm:$0xff] (!%p343_p9)   ;;  %s2151_s22 = sshll.u32 (!%p343_p9), %s381_s16, 4  ;;  %s3749_s22 = int_to_ptr.vmem [resolvable:$true] %s2151_s22 }
  0x13   : > { %v2622_v12 = vld [vmem:[%s3790_s1 + $0x64] ss:$8 sps:$4 sm:$0xff] (!%p343_p9)   ;;  %v2624_v14 = vld [vmem:[%s3790_s1 + $0x60] ss:$8 sps:$4 sm:$0xff] (!%p343_p9)   ;;  %v2625_v15 = vld [vmem:[%s3790_s1 + $0x74] ss:$8 sps:$4 sm:$0xff] (!%p343_p9)  }
  0x14   : > { %901 = vmatpush1.bf16.msra.mxu0 (!%p343_p9), %v2609_v3  ;;  %v2627_v16 = vld [vmem:[%s3790_s1 + $0x70] ss:$8 sps:$4 sm:$0xff] (!%p343_p9)   ;;  %v2628_v17 = vld [vmem:[%s3790_s1 + $0x84] ss:$8 sps:$4 sm:$0xff] (!%p343_p9)   ;;  %v2630_v18 = vld [vmem:[%s3790_s1 + $0x80] ss:$8 sps:$4 sm:$0xff] (!%p343_p9)  }
  0x15   : > { %902 = vmatprep.subr.bf16.mxu0 (!%p343_p9), %v2610_v4  ;;  %v2631_v19 = vld [vmem:[%s3790_s1 + $0x94] ss:$8 sps:$4 sm:$0xff] (!%p343_p9)   ;;  %v2633_v20 = vld [vmem:[%s3790_s1 + $0x90] ss:$8 sps:$4 sm:$0xff] (!%p343_p9)   ;;  %v2634_v21 = vld [vmem:[%s3790_s1 + $0xa4] ss:$8 sps:$4 sm:$0xff] (!%p343_p9)  }
  0x16   : > { %s3810_s29 = smov (!%p383_p10, %s382_s29), 17  ;;  %v2636_v22 = vld [vmem:[%s3790_s1 + $0xa0] ss:$8 sps:$4 sm:$0xff]   ;;  %v2637_v23 = vld [vmem:[%s3790_s1 + $0xb4] ss:$8 sps:$4 sm:$0xff]   ;;  %s2957_s13 = smov [#allocation2]  }
  0x17   : > { %s2426_s14 = sshll.u32 %s3810_s29, 4  ;;  %v2639_v24 = vld [vmem:[%s3790_s1 + $0xb0] ss:$8 sps:$4 sm:$0xff]   ;;  %v2640_v25 = vld [vmem:[%s3790_s1 + $0xc4] ss:$8 sps:$4 sm:$0xff]   ;;  %s2890_s29 = scalar_lea.vmem %s3749_s22, 16 }
  0x18   : > { %903 = vmatpush1.bf16.msra.mxu0 %v2612_v5  ;;  %s3106_s24 = scalar_lea.vmem %s3789_s0, %s2426_s14  ;;  %v2642_v26 = vld [vmem:[%s3790_s1 + $0xc0] ss:$8 sps:$4 sm:$0xff]   ;;  %v2643_v27 = vld [vmem:[%s3790_s1 + $0xd4] ss:$8 sps:$4 sm:$0xff]   ;;  %v2645_v28 = vld [vmem:[%s3790_s1 + $0xd0] ss:$8 sps:$4 sm:$0xff]   ;;  %p2891_p11 = scmp.ne.s32.totalorder %s3749_s22, %s2890_s29 }
  0x19   : > { %904 = vmatprep.subr.bf16.mxu0 %v2613_v6  ;;  %v2654_v13 = vld [vmem:[%s3106_s24 + $0x4] ss:$16 sps:$4 sm:$0xff]   ;;  %v2648_v30 = vld [vmem:[%s3790_s1 + $0xe0] ss:$8 sps:$4 sm:$0xff]   ;;  %v2733_v35 = vld [vmem:[%s3792_s3 + $0x10] ss:$8 sps:$4 sm:$0xff]  }
  0x1a   : > { %930 = vmatprep.mubr.bf16.mxu0 %v2654_v13  ;;  %v2646_v29 = vld [vmem:[%s3790_s1 + $0xe4] ss:$8 sps:$4 sm:$0xff]   ;;  %v2730_v32 = vld [vmem:[%s3792_s3] ss:$8 sps:$4 sm:$0xff]   ;;  %v2649_v33 = vld [vmem:[%s3790_s1 + $0xf4] ss:$8 sps:$4 sm:$0xff]   ;;  %p2892_p12 = pnand %p2891_p11, %p3056_p5 }
  0x1b   : > { %v2728_v31 = vld [vmem:[%s3792_s3 + $0x4] ss:$8 sps:$4 sm:$0xff]   ;;  %v2731_v34 = vld [vmem:[%s3792_s3 + $0x14] ss:$8 sps:$4 sm:$0xff]   ;;  %v2651_v37 = vld [vmem:[%s3790_s1 + $0xf0] ss:$8 sps:$4 sm:$0xff]  }
  0x1c   : > { %905 = vmatpush1.bf16.msra.mxu0 %v2615_v7  ;;  %1382 = vmatprep.subr.bf16.mxu1 %v2728_v31  ;;  %v2734_v36 = vld [vmem:[%s3792_s3 + $0x24] ss:$8 sps:$4 sm:$0xff]   ;;  %v2652_v38 = vld [vmem:[%s3106_s24] ss:$16 sps:$4 sm:$0xff]   ;;  %v2737_v42 = vld [vmem:[%s3792_s3 + $0x34] ss:$8 sps:$4 sm:$0xff]   ;;  %p2893_p13 = pneg %p2892_p12 }
  0x1d   : > { %906 = vmatprep.subr.bf16.mxu0 %v2616_v8  ;;  %1383 = vmatpush1.bf16.msra.mxu1 %v2730_v32  ;;  %v2657_v39 = vld [vmem:[%s3790_s1 + $0x104] ss:$8 sps:$4 sm:$0xff]   ;;  %v2655_v40 = vld [vmem:[%s3790_s1 + $0x100] ss:$8 sps:$4 sm:$0xff]   ;;  %v2660_v44 = vld [vmem:[%s3790_s1 + $0x114] ss:$8 sps:$4 sm:$0xff]  }
  0x1e   : > { %1384 = vmatprep.subr.bf16.mxu1 %v2731_v34  ;;  %v2736_v41 = vld [vmem:[%s3792_s3 + $0x20] ss:$8 sps:$4 sm:$0xff]   ;;  %v2679_v43 = vld [vmem:[%s3106_s24 + $0x24] ss:$16 sps:$4 sm:$0xff]   ;;  %v2658_v45 = vld [vmem:[%s3790_s1 + $0x110] ss:$8 sps:$4 sm:$0xff]  }
  0x1f   : > { %v2739_v46 = vld [vmem:[%s3792_s3 + $0x30] ss:$8 sps:$4 sm:$0xff]   ;;  %v2663_v47 = vld [vmem:[%s3790_s1 + $0x124] ss:$8 sps:$4 sm:$0xff]   ;;  %v2742_v49 = vld [vmem:[%s3792_s3 + $0x40] ss:$8 sps:$4 sm:$0xff]  }
  0x20   : > { %907 = vmatpush1.bf16.msra.mxu0 %v2618_v9  ;;  %v2740_v48 = vld [vmem:[%s3792_s3 + $0x44] ss:$8 sps:$4 sm:$0xff]   ;;  %v2681_v50 = vld [vmem:[%s3106_s24 + $0x20] ss:$16 sps:$4 sm:$0xff]   ;;  %v2743_v51 = vld [vmem:[%s3792_s3 + $0x54] ss:$8 sps:$4 sm:$0xff]  }
  0x21   : > { %908 = vmatprep.subr.bf16.mxu0 %v2619_v10  ;;  %1385 = vmatpush1.bf16.msra.mxu1 %v2733_v35  ;;  %v2661_v52 = vld [vmem:[%s3790_s1 + $0x120] ss:$8 sps:$4 sm:$0xff]   ;;  %v2688_v53 = vld [vmem:[%s3106_s24 + $0x44] ss:$16 sps:$4 sm:$0xff]   ;;  %v2745_v55 = vld [vmem:[%s3792_s3 + $0x50] ss:$8 sps:$4 sm:$0xff]  }
  0x22   : > { %1386 = vmatprep.subr.bf16.mxu1 %v2734_v36  ;;  %v2666_v54 = vld [vmem:[%s3790_s1 + $0x134] ss:$8 sps:$4 sm:$0xff]   ;;  %v2746_v56 = vld [vmem:[%s3792_s3 + $0x64] ss:$8 sps:$4 sm:$0xff]   ;;  %v2664_v57 = vld [vmem:[%s3790_s1 + $0x130] ss:$8 sps:$4 sm:$0xff]  }
  0x23   : > { %v2669_v58 = vld [vmem:[%s3790_s1 + $0x144] ss:$8 sps:$4 sm:$0xff]   ;;  %v2748_v59 = vld [vmem:[%s3792_s3 + $0x60] ss:$8 sps:$4 sm:$0xff]   ;;  %v2749_v61 = vld [vmem:[%s3792_s3 + $0x74] ss:$8 sps:$4 sm:$0xff]  }
  0x24   : > { %909 = vmatpush1.bf16.msra.mxu0 %v2621_v11  ;;  %v2690_v60 = vld [vmem:[%s3106_s24 + $0x40] ss:$16 sps:$4 sm:$0xff]   ;;  %v2697_v63 = vld [vmem:[%s3106_s24 + $0x64] ss:$16 sps:$4 sm:$0xff]   ;;  %v2714_v31 = vld [vmem:[%s3106_s24 + $0x8] ss:$16 sps:$4 sm:$0xff]  }
  0x25   : > { %910 = vmatprep.subr.bf16.mxu0 %v2622_v12  ;;  %1387 = vmatpush1.bf16.msra.mxu1 %v2736_v41  ;;  %v2667_v62 = vld [vmem:[%s3790_s1 + $0x140] ss:$8 sps:$4 sm:$0xff]   ;;  %v2672_v0 = vld [vmem:[%s3790_s1 + $0x154] ss:$8 sps:$4 sm:$0xff]   ;;  %v2751_v1 = vld [vmem:[%s3792_s3 + $0x70] ss:$8 sps:$4 sm:$0xff]  }
  0x26   : > { %1388 = vmatprep.subr.bf16.mxu1 %v2737_v42  ;;  %v2752_v2 = vld [vmem:[%s3792_s3 + $0x84] ss:$8 sps:$4 sm:$0xff]   ;;  %v2670_v3 = vld [vmem:[%s3790_s1 + $0x150] ss:$8 sps:$4 sm:$0xff]   ;;  %v2754_v6 = vld [vmem:[%s3792_s3 + $0x80] ss:$8 sps:$4 sm:$0xff]  }
  0x27   : > { %v2675_v4 = vld [vmem:[%s3790_s1 + $0x164] ss:$8 sps:$4 sm:$0xff]   ;;  %v2699_v7 = vld [vmem:[%s3106_s24 + $0x60] ss:$16 sps:$4 sm:$0xff]   ;;  %v2755_v8 = vld [vmem:[%s3792_s3 + $0x94] ss:$8 sps:$4 sm:$0xff]  }
  0x28   : > { %911 = vmatpush1.bf16.msra.mxu0 %v2624_v14  ;;  %v406_v5 = vld [vmem:[%s3106_s24 + $0x80] sm:$0xff]  ;;  %v2678_v10 = vld [vmem:[%s3790_s1 + $0x174] ss:$8 sps:$4 sm:$0xff]   ;;  %v2676_v12 = vld [vmem:[%s3790_s1 + $0x170] ss:$8 sps:$4 sm:$0xff]   ;;  %s2894_s26 = sshll.u32 %s2957_s13, 4  ;;  %s2895_s26 = int_to_ptr.vmem [resolvable:$false] %s2894_s26 }
  0x29   : > { %912 = vmatprep.subr.bf16.mxu0 %v2625_v15  ;;  %1389 = vmatpush1.bf16.msra.mxu1 %v2739_v46  ;;  %v2673_v9 = vld [vmem:[%s3790_s1 + $0x160] ss:$8 sps:$4 sm:$0xff]   ;;  %v2229_v11 = vcombine.high %v406_v5, %v406_v5  ;;  %v2684_v13 = vld [vmem:[%s3790_s1 + $0x184] ss:$8 sps:$4 sm:$0xff]   ;;  %v2228_v14 = vcombine.low %v406_v5, %v406_v5  ;;  %v2757_v41 = vld [vmem:[%s3792_s3 + $0x90] ss:$8 sps:$4 sm:$0xff]   ;;  %p2897_p0 = scmp.lt.s32.totalorder %s3749_s22, %s2895_s26 }
  0x2a   : > { %1390 = vmatprep.subr.bf16.mxu1 %v2740_v48  ;;  %v2682_v15 = vld [vmem:[%s3790_s1 + $0x180] ss:$8 sps:$4 sm:$0xff]   ;;  %v2717_v32 = vld [vmem:[%s3106_s24 + $0x2c] ss:$16 sps:$4 sm:$0xff]   ;;  %s2896_s14 = scalar_lea.vmem %s2895_s26, 32 }
  0x2b   : > { %v2720_v34 = vld [vmem:[%s3106_s24 + $0x4c] ss:$16 sps:$4 sm:$0xff]   ;;  %v2722_v35 = vld [vmem:[%s3106_s24 + $0x48] ss:$16 sps:$4 sm:$0xff]   ;;  %p2898_p1 = scmp.lt.s32.totalorder %s2896_s14, %s2890_s29 }
  0x2c   : > { %913 = vmatpush1.bf16.msra.mxu0 %v2627_v16  ;;  %v2716_v16 = vld [vmem:[%s3106_s24 + $0xc] ss:$16 sps:$4 sm:$0xff]  }
  0x2d   : > { %914 = vmatprep.subr.bf16.mxu0 %v2628_v17  ;;  %1391 = vmatpush1.bf16.msra.mxu1 %v2742_v49  ;;  %v2687_v17 = vld [vmem:[%s3790_s1 + $0x194] ss:$8 sps:$4 sm:$0xff]   ;;  %v2758_v42 = vld [vmem:[%s3792_s3 + $0xa4] ss:$8 sps:$4 sm:$0xff]   ;;  %v2769_v49 = vld [vmem:[%s3792_s3 + $0xd0] ss:$8 sps:$4 sm:$0xff]   ;;  %p2899_p2 = por %p2898_p1, %p2897_p0 }
  0x2e   : > { %1392 = vmatprep.subr.bf16.mxu1 %v2743_v51  ;;  %v2723_v36 = vld [vmem:[%s3106_s24 + $0x6c] ss:$16 sps:$4 sm:$0xff]   ;;  %v2772_v51 = vld [vmem:[%s3792_s3 + $0xe0] ss:$8 sps:$4 sm:$0xff]  }
  0x2f   : > { %v2764_v46 = vld [vmem:[%s3792_s3 + $0xc4] ss:$8 sps:$4 sm:$0xff]   ;;  %v2767_v48 = vld [vmem:[%s3792_s3 + $0xd4] ss:$8 sps:$4 sm:$0xff]   ;;  %p2900_p3 = pnand %p2899_p2, %p2893_p13 }
  0x30   : > { %915 = vmatpush1.bf16.msra.mxu0 %v2630_v18  ;;  %v2685_v18 = vld [vmem:[%s3790_s1 + $0x190] ss:$8 sps:$4 sm:$0xff]  }
  0x31   : > { %916 = vmatprep.subr.bf16.mxu0 %v2631_v19  ;;  %1393 = vmatpush1.bf16.msra.mxu1 %v2745_v55  ;;  %v2693_v19 = vld [vmem:[%s3790_s1 + $0x1a4] ss:$8 sps:$4 sm:$0xff]  }
  0x32   : > { %1394 = vmatprep.subr.bf16.mxu1 %v2746_v56 }
  0x34   : > { %917 = vmatpush1.bf16.msra.mxu0 %v2633_v20  ;;  %v2691_v20 = vld [vmem:[%s3790_s1 + $0x1a0] ss:$8 sps:$4 sm:$0xff]  }
  0x35   : > { %918 = vmatprep.subr.bf16.mxu0 %v2634_v21  ;;  %1395 = vmatpush1.bf16.msra.mxu1 %v2748_v59  ;;  %v2696_v21 = vld [vmem:[%s3790_s1 + $0x1b4] ss:$8 sps:$4 sm:$0xff]  }
  0x36   : > { %1396 = vmatprep.subr.bf16.mxu1 %v2749_v61 }
  0x38   : > { %919 = vmatpush1.bf16.msra.mxu0 %v2636_v22  ;;  %v2694_v22 = vld [vmem:[%s3790_s1 + $0x1b0] ss:$8 sps:$4 sm:$0xff]  }
  0x39   : > { %920 = vmatprep.subr.bf16.mxu0 %v2637_v23  ;;  %1397 = vmatpush1.bf16.msra.mxu1 %v2751_v1  ;;  %v2702_v23 = vld [vmem:[%s3790_s1 + $0x1c4] ss:$8 sps:$4 sm:$0xff]  }
  0x3a   : > { %1398 = vmatprep.subr.bf16.mxu1 %v2752_v2 }
  0x3c   : > { %921 = vmatpush1.bf16.msra.mxu0 %v2639_v24  ;;  %v2700_v24 = vld [vmem:[%s3790_s1 + $0x1c0] ss:$8 sps:$4 sm:$0xff]  }
  0x3d   : > { %922 = vmatprep.subr.bf16.mxu0 %v2640_v25  ;;  %1399 = vmatpush1.bf16.msra.mxu1 %v2754_v6  ;;  %v2705_v25 = vld [vmem:[%s3790_s1 + $0x1d4] ss:$8 sps:$4 sm:$0xff]  }
  0x3e   : > { %1400 = vmatprep.subr.bf16.mxu1 %v2755_v8 }
  0x40   : > { %923 = vmatpush1.bf16.msra.mxu0 %v2642_v26  ;;  %v2703_v26 = vld [vmem:[%s3790_s1 + $0x1d0] ss:$8 sps:$4 sm:$0xff]  }
  0x41   : > { %924 = vmatprep.subr.bf16.mxu0 %v2643_v27  ;;  %v2710_v27 = vld [vmem:[%s3790_s1 + $0x1e4] ss:$8 sps:$4 sm:$0xff]   ;;  %1401 = vmatpush1.bf16.msra.mxu1 %v2757_v41 }
  0x42   : > { %1402 = vmatprep.subr.bf16.mxu1 %v2758_v42 }
  0x44   : > { %925 = vmatpush1.bf16.msra.mxu0 %v2645_v28  ;;  %v2708_v28 = vld [vmem:[%s3790_s1 + $0x1e0] ss:$8 sps:$4 sm:$0xff]  }
  0x45   : > { %926 = vmatprep.subr.bf16.mxu0 %v2646_v29  ;;  %v2713_v29 = vld [vmem:[%s3790_s1 + $0x1f4] ss:$8 sps:$4 sm:$0xff]  }
  0x48   : > { %927 = vmatpush1.bf16.msra.mxu0 %v2648_v30  ;;  %v2711_v30 = vld [vmem:[%s3790_s1 + $0x1f0] ss:$8 sps:$4 sm:$0xff]  }
  0x49   : > { %928 = vmatprep.subr.bf16.mxu0 %v2649_v33  ;;  %v2719_v33 = vld [vmem:[%s3106_s24 + $0x28] ss:$16 sps:$4 sm:$0xff]  }
  0x4c   : > { %929 = vmatpush1.bf16.msra.mxu0 %v2651_v37  ;;  %v407_v37 = vld [vmem:[%s3106_s24 + $0x88] sm:$0xff] }
  0x4d   : > { %979 = vmatprep.subr.bf16.mxu0 %v2657_v39  ;;  %v2231_v39 = vcombine.high %v407_v37, %v407_v37 }
  0x4f   : > { %931 = vmatmul.mubr.bf16.vlgmr.msra.gmra.mrb[0].mxu0 %v2652_v38  ;;  %v2725_v38 = vld [vmem:[%s3106_s24 + $0x68] ss:$16 sps:$4 sm:$0xff]   ;;  %s2423_s24 = sshll.u32 %s3039_s21, 4  ;;  %s2139_s21 = scalar_lea.sflag [#allocation3], %s380_s15 }
  0x50   : > { %980 = vmatpush1.bf16.msra.mxu0 %v2655_v40  ;;  %940 = vmatprep.mubr.bf16.mxu0 %v2679_v43  ;;  %v2230_v40 = vcombine.low %v407_v37, %v407_v37  ;;  %v2760_v43 = vld [vmem:[%s3792_s3 + $0xa0] ss:$8 sps:$4 sm:$0xff]   ;;  %s3747_s12 = scalar_lea.hbm %s3800_s11, %s2423_s24 }
  0x51   : > { %981 = vmatprep.subr.bf16.mxu0 %v2660_v44  ;;  %1403 = vmatpush1.bf16.msra.mxu1 %v2760_v43  ;;  %v2761_v44 = vld [vmem:[%s3792_s3 + $0xb4] ss:$8 sps:$4 sm:$0xff]  }
  0x52   : > { %1404 = vmatprep.subr.bf16.mxu1 %v2761_v44 }
  0x54   : > { %982 = vmatpush1.bf16.msra.mxu0 %v2658_v45  ;;  %v2763_v45 = vld [vmem:[%s3792_s3 + $0xb0] ss:$8 sps:$4 sm:$0xff]  }
  0x55   : > { %983 = vmatprep.subr.bf16.mxu0 %v2663_v47  ;;  %1405 = vmatpush1.bf16.msra.mxu1 %v2763_v45  ;;  %v2766_v47 = vld [vmem:[%s3792_s3 + $0xc0] ss:$8 sps:$4 sm:$0xff]  }
  0x56   : > { %1406 = vmatprep.subr.bf16.mxu1 %v2764_v46 }
  0x57   : > { %941 = vmatmul.mubr.bf16.gmra.mrb[4].mxu0 %v2681_v50  ;;  %v2770_v50 = vld [vmem:[%s3792_s3 + $0xe4] ss:$8 sps:$4 sm:$0xff]  }
  0x58   : > { %984 = vmatpush1.bf16.msra.mxu0 %v2661_v52  ;;  %950 = vmatprep.mubr.bf16.mxu0 %v2688_v53  ;;  %v2773_v52 = vld [vmem:[%s3792_s3 + $0xf4] ss:$8 sps:$4 sm:$0xff]   ;;  %v2775_v53 = vld [vmem:[%s3792_s3 + $0xf0] ss:$8 sps:$4 sm:$0xff]  }
  0x59   : > { %985 = vmatprep.subr.bf16.mxu0 %v2666_v54  ;;  %1407 = vmatpush1.bf16.msra.mxu1 %v2766_v47  ;;  %v474_v54 = vlaneseq }
  0x5a   : > { %1408 = vmatprep.subr.bf16.mxu1 %v2767_v48 }
  0x5b   : > { %v3378_v55 = vshrl.u32 %v474_v54, 7 }
  0x5c   : > { %986 = vmatpush1.bf16.msra.mxu0 %v2664_v57  ;;  %v472_v57 = vld [vmem:[%s3791_s2] sm:$0x3] }
  0x5d   : > { %987 = vmatprep.subr.bf16.mxu0 %v2669_v58  ;;  %1409 = vmatpush1.bf16.msra.mxu1 %v2769_v49  ;;  %v476_v56 = vsub.s32 0, %v3378_v55  ;;  %v480_v58 = vsub.s32 1, %v3378_v55 }
  0x5e   : > { %1410 = vmatprep.subr.bf16.mxu1 %v2770_v50 }
  0x5f   : > { %951 = vmatmul.mubr.bf16.gmra.mrb[8].mxu0 %v2690_v60  ;;  %v3387_v59 = vrot.slane %v472_v57, %v476_v56  ;;  %v3391_v60 = vrot.slane %v472_v57, %v480_v58 }
  0x60   : > { %988 = vmatpush1.bf16.msra.mxu0 %v2667_v62  ;;  %960 = vmatprep.mubr.bf16.mxu0 %v2697_v63 }
  0x61   : > { %989 = vmatprep.subr.bf16.mxu0 %v2672_v0  ;;  %1411 = vmatpush1.bf16.msra.mxu1 %v2772_v51 }
  0x62   : > { %1412 = vmatprep.subr.bf16.mxu1 %v2773_v52 }
  0x64   : > { %990 = vmatpush1.bf16.msra.mxu0 %v2670_v3 }
  0x65   : > { %991 = vmatprep.subr.bf16.mxu0 %v2675_v4  ;;  %1413 = vmatpush1.bf16.msra.mxu1 %v2775_v53 }
  0x67   : > { %961 = vmatmul.mubr.bf16.gmra.mrb[12].mxu0 %v2699_v7 }
  0x68   : > { %992 = vmatpush1.bf16.msra.mxu0 %v2673_v9  ;;  %970 = vmatprep.mubr.bf16.mxu0 %v2229_v11 }
  0x69   : > { %993 = vmatprep.subr.bf16.mxu0 %v2678_v10 }
  0x6c   : > { %994 = vmatpush1.bf16.msra.mxu0 %v2676_v12 }
  0x6d   : > { %995 = vmatprep.subr.bf16.mxu0 %v2684_v13 }
  0x6f   : > { %971 = vmatmul.mubr.bf16.gmra.mrb[16].mxu0 %v2228_v14 }
  0x70   : > { %996 = vmatpush1.bf16.msra.mxu0 %v2682_v15  ;;  %1011 = vmatprep.mubr.bf16.mxu0 %v2716_v16 }
  0x71   : > { %997 = vmatprep.subr.bf16.mxu0 %v2687_v17 }
  0x74   : > { %998 = vmatpush1.bf16.msra.mxu0 %v2685_v18 }
  0x75   : > { %999 = vmatprep.subr.bf16.mxu0 %v2693_v19 }
  0x78   : > { %1000 = vmatpush1.bf16.msra.mxu0 %v2691_v20 }
  0x79   : > { %1001 = vmatprep.subr.bf16.mxu0 %v2696_v21 }
  0x7c   : > { %1002 = vmatpush1.bf16.msra.mxu0 %v2694_v22 }
  0x7d   : > { %1003 = vmatprep.subr.bf16.mxu0 %v2702_v23 }
  0x80   : > { %1004 = vmatpush1.bf16.msra.mxu0 %v2700_v24 }
  0x81   : > { %1005 = vmatprep.subr.bf16.mxu0 %v2705_v25 }
  0x84   : > { %1006 = vmatpush1.bf16.msra.mxu0 %v2703_v26 }
  0x85   : > { %1007 = vmatprep.subr.bf16.mxu0 %v2710_v27 }
  0x88   : > { %1008 = vmatpush1.bf16.msra.mxu0 %v2708_v28 }
  0x89   : > { %1009 = vmatprep.subr.bf16.mxu0 %v2713_v29 }
  0x8c   : > { %1010 = vmatpush1.bf16.msra.mxu0 %v2711_v30 }
  0x8f   : > { %1012 = vmatmul.mubr.bf16.vlgmr.msra.gmra.mrb[0].mxu0 %v2714_v31 }
  0x90   : > { %1021 = vmatprep.mubr.bf16.mxu0 %v2717_v32 }
  0x97   : > { %1022 = vmatmul.mubr.bf16.gmra.mrb[4].mxu0 %v2719_v33 }
  0x98   : > { %1031 = vmatprep.mubr.bf16.mxu0 %v2720_v34 }
  0x9f   : > { %1032 = vmatmul.mubr.bf16.gmra.mrb[8].mxu0 %v2722_v35 }
  0xa0   : > { %1041 = vmatprep.mubr.bf16.mxu0 %v2723_v36 }
  0xa7   : > { %1042 = vmatmul.mubr.bf16.gmra.mrb[12].mxu0 %v2725_v38 }
  0xa8   : > { %1051 = vmatprep.mubr.bf16.mxu0 %v2231_v39 }
  0xaf   : > { %1052 = vmatmul.mubr.bf16.gmra.mrb[16].mxu0 %v2230_v40 }
 0x162   : > { %v1013_v61 = vpop.f32.mrb[0].mxu0 }
 0x163   : > { %v3394_v62 = vadd.f32 %v1013_v61, %v3387_v59  ;;  %v1015_v63 = vpop.f32.mrb[1].mxu0 }
 0x164   : > { %v3397_v0 = vadd.f32 %v1015_v63, %v3391_v60  ;;  %v1017_v1 = vpop.f32.mrb[2].mxu0 }
 0x165   : > { %v1078_v2 = vmin.f32 %v3394_v62, 0.0  ;;  %v3401_v3 = vadd.f32 %v1017_v1, %v3387_v59  ;;  %v1019_v4 = vpop.f32.mrb[3].mxu0  ;;  %vm1060_vm0 = vcmp.gt.f32.partialorder %v3394_v62, 0.0 }
 0x166   : > { %v1079_v5 = vmin.f32 %v3397_v0, 0.0  ;;  %v2527_v6 = vadd.f32 %v1019_v4, %v3391_v60  ;;  %vm1061_vm1 = vcmp.gt.f32.partialorder %v3397_v0, 0.0 }
 0x167   : > { %v1096_v7 = vmul.f32 1.442695, %v1078_v2  ;;  %v1080_v8 = vmin.f32 %v3401_v3, 0.0  ;;  %vm1062_vm2 = vcmp.gt.f32.partialorder %v3401_v3, 0.0 }
 0x168   : > { %v1098_v9 = vmul.f32 1.442695, %v1079_v5  ;;  %v1081_v10 = vmin.f32 %v2527_v6, 0.0  ;;  %vm1063_vm3 = vcmp.gt.f32.partialorder %v2527_v6, 0.0 }
 0x169   : > { %2810 = vpow2.f32 %v1096_v7  ;;  %v1100_v11 = vmul.f32 1.442695, %v1080_v8 }
 0x16a   : > { %2812 = vpow2.f32 %v1098_v9  ;;  %v1102_v12 = vmul.f32 1.442695, %v1081_v10  ;;  %v1023_v13 = vpop.f32.mrb[4].mxu0 }
 0x16b   : > { %2814 = vpow2.f32 %v1100_v11  ;;  %v3407_v14 = vadd.f32 %v1023_v13, %v3387_v59  ;;  %v1025_v15 = vpop.f32.mrb[5].mxu0 }
 0x16c   : > { %2816 = vpow2.f32 %v1102_v12  ;;  %v3410_v16 = vadd.f32 %v1025_v15, %v3391_v60  ;;  %v1027_v17 = vpop.f32.mrb[6].mxu0 }
 0x16d   : > { %v1082_v18 = vmin.f32 %v3407_v14, 0.0  ;;  %v3414_v19 = vadd.f32 %v1027_v17, %v3387_v59  ;;  %v1029_v20 = vpop.f32.mrb[7].mxu0  ;;  %vm1064_vm4 = vcmp.gt.f32.partialorder %v3407_v14, 0.0 }
 0x16e   : > { %v1083_v21 = vmin.f32 %v3410_v16, 0.0  ;;  %v3418_v22 = vadd.f32 %v1029_v20, %v3391_v60  ;;  %vm1065_vm5 = vcmp.gt.f32.partialorder %v3410_v16, 0.0 }
 0x16f   : > { %v1104_v23 = vmul.f32 1.442695, %v1082_v18  ;;  %v1084_v24 = vmin.f32 %v3414_v19, 0.0  ;;  %vm1066_vm6 = vcmp.gt.f32.partialorder %v3414_v19, 0.0 }
 0x170   : > { %v1106_v25 = vmul.f32 1.442695, %v1083_v21  ;;  %v1085_v26 = vmin.f32 %v3418_v22, 0.0  ;;  %vm1067_vm7 = vcmp.gt.f32.partialorder %v3418_v22, 0.0 }
 0x171   : > { %2818 = vpow2.f32 %v1104_v23  ;;  %v1108_v27 = vmul.f32 1.442695, %v1084_v24 }
 0x172   : > { %2820 = vpow2.f32 %v1106_v25  ;;  %v1110_v28 = vmul.f32 1.442695, %v1085_v26  ;;  %v1033_v29 = vpop.f32.mrb[8].mxu0 }
 0x173   : > { %v2811_v30 = vpop.eup %2810  ;;  %2822 = vpow2.f32 %v1108_v27  ;;  %v3423_v31 = vadd.f32 %v1033_v29, %v3387_v59  ;;  %v1035_v32 = vpop.f32.mrb[9].mxu0 }
 0x174   : > { %v2813_v33 = vpop.eup %2812  ;;  %2824 = vpow2.f32 %v1110_v28  ;;  %v3427_v34 = vadd.f32 %v1035_v32, %v3391_v60  ;;  %v1037_v35 = vpop.f32.mrb[10].mxu0  ;;  %v2296_v37 = vadd.f32 -1.0, %v2811_v30 }
 0x175   : > { %v2815_v36 = vpop.eup %2814  ;;  %v1086_v38 = vmin.f32 %v3423_v31, 0.0  ;;  %v3431_v39 = vadd.f32 %v1037_v35, %v3387_v59  ;;  %v1039_v40 = vpop.f32.mrb[11].mxu0  ;;  %v2297_v41 = vadd.f32 -1.0, %v2813_v33  ;;  %vm1068_vm8 = vcmp.gt.f32.partialorder %v3423_v31, 0.0 }
 0x176   : > { %v2817_v42 = vpop.eup %2816  ;;  %v2298_v43 = vadd.f32 -1.0, %v2815_v36  ;;  %v1087_v44 = vmin.f32 %v3427_v34, 0.0  ;;  %v3435_v45 = vadd.f32 %v1039_v40, %v3391_v60  ;;  %v1150_v54 = vsel %vm1060_vm0, %v3394_v62, %v2296_v37 }
 0x177   : > { %v1112_v46 = vmul.f32 1.442695, %v1086_v38  ;;  %v1088_v47 = vmin.f32 %v3431_v39, 0.0  ;;  %v2299_v48 = vadd.f32 -1.0, %v2817_v42  ;;  %v1151_v51 = vsel %vm1061_vm1, %v3397_v0, %v2297_v41 }
 0x178   : > { %v1114_v49 = vmul.f32 1.442695, %v1087_v44  ;;  %v1089_v50 = vmin.f32 %v3435_v45, 0.0  ;;  %v1152_v1 = vsel %vm1062_vm2, %v3401_v3, %v2298_v43  ;;  %vm1069_vm9 = vcmp.gt.f32.partialorder %v3427_v34, 0.0 }
 0x179   : > { %2826 = vpow2.f32 %v1112_v46  ;;  %v1116_v52 = vmul.f32 1.442695, %v1088_v47  ;;  %v1153_v53 = vsel %vm1063_vm3, %v2527_v6, %v2299_v48  ;;  %v1168_v5 = vpack.c.bf16 %v1152_v1, %v1150_v54 }
 0x17a   : > { %2828 = vpow2.f32 %v1114_v49  ;;  %v1118_v57 = vmul.f32 1.442695, %v1089_v50  ;;  %v1043_v61 = vpop.f32.mrb[12].mxu0  ;;  %v1169_v63 = vpack.c.bf16 %v1153_v53, %v1151_v51  ;;  %vm1070_vm10 = vcmp.gt.f32.partialorder %v3431_v39, 0.0 }
 0x17b   : > { %v2819_v2 = vpop.eup %2818  ;;  %2830 = vpow2.f32 %v1116_v52  ;;  %v3449_v4 = vadd.f32 %v1043_v61, %v3387_v59  ;;  %v1045_v0 = vpop.f32.mrb[13].mxu0  ;;  %vm1071_vm11 = vcmp.gt.f32.partialorder %v3435_v45, 0.0 }
 0x17c   : > { %v2821_v6 = vpop.eup %2820  ;;  %2832 = vpow2.f32 %v1118_v57  ;;  %v3453_v62 = vadd.f32 %v1045_v0, %v3391_v60  ;;  %v1047_v7 = vpop.f32.mrb[14].mxu0  ;;  %1414 = vmatprep.mubr.bf16.mxu1 %v1169_v63  ;;  %v2300_v9 = vadd.f32 -1.0, %v2819_v2 }
 0x17d   : > { %v2823_v8 = vpop.eup %2822  ;;  %v2301_v10 = vadd.f32 -1.0, %v2821_v6  ;;  %v1090_v3 = vmin.f32 %v3449_v4, 0.0  ;;  %v3457_v11 = vadd.f32 %v1047_v7, %v3387_v59  ;;  %v1049_v12 = vpop.f32.mrb[15].mxu0  ;;  %1415 = vmatmul.mubr.bf16.vlgmr.msra.gmra.mrb[0].mxu1 %v1168_v5  ;;  %vm1072_vm12 = vcmp.gt.f32.partialorder %v3449_v4, 0.0 }
 0x17e   : > { %v2825_v13 = vpop.eup %2824  ;;  %v2302_v15 = vadd.f32 -1.0, %v2823_v8  ;;  %v1091_v17 = vmin.f32 %v3453_v62, 0.0  ;;  %v3462_v18 = vadd.f32 %v1049_v12, %v3391_v60  ;;  %v1154_v29 = vsel %vm1064_vm4, %v3407_v14, %v2300_v9 }
 0x17f   : > { %v2303_v20 = vadd.f32 -1.0, %v2825_v13  ;;  %v1120_v21 = vmul.f32 1.442695, %v1090_v3  ;;  %v1092_v23 = vmin.f32 %v3457_v11, 0.0  ;;  %v1155_v26 = vsel %vm1065_vm5, %v3410_v16, %v2301_v10 }
 0x180   : > { %v1122_v24 = vmul.f32 1.442695, %v1091_v17  ;;  %v1093_v25 = vmin.f32 %v3462_v18, 0.0  ;;  %v1156_v35 = vsel %vm1066_vm6, %v3414_v19, %v2302_v15  ;;  %vm1074_vm13 = vcmp.gt.f32.partialorder %v3457_v11, 0.0 }
 0x181   : > { %2834 = vpow2.f32 %v1120_v21  ;;  %v1124_v27 = vmul.f32 1.442695, %v1092_v23  ;;  %v1157_v28 = vsel %vm1067_vm7, %v3418_v22, %v2303_v20  ;;  %v1170_v38 = vpack.c.bf16 %v1156_v35, %v1154_v29 }
 0x182   : > { %2836 = vpow2.f32 %v1122_v24  ;;  %v1126_v30 = vmul.f32 1.442695, %v1093_v25  ;;  %v1053_v32 = vpop.f32.mrb[16].mxu0  ;;  %v1171_v33 = vpack.c.bf16 %v1157_v28, %v1155_v26  ;;  %vm1073_vm14 = vcmp.gt.f32.partialorder %v3453_v62, 0.0 }
 0x183   : > { %v2827_v36 = vpop.eup %2826  ;;  %2838 = vpow2.f32 %v1124_v27  ;;  %v3477_v16 = vadd.f32 %v1053_v32, %v3387_v59  ;;  %v1055_v37 = vpop.f32.mrb[17].mxu0  ;;  %vm1075_vm15 = vcmp.gt.f32.partialorder %v3462_v18, 0.0 }
 0x184   : > { %v2829_v22 = vpop.eup %2828  ;;  %v2304_v40 = vadd.f32 -1.0, %v2827_v36  ;;  %2840 = vpow2.f32 %v1126_v30  ;;  %v2541_v14 = vadd.f32 %v1055_v37, %v3391_v60  ;;  %v1057_v41 = vpop.f32.mrb[18].mxu0  ;;  %1424 = vmatprep.mubr.bf16.mxu1 %v1171_v33 }
 0x185   : > { %v2831_v42 = vpop.eup %2830  ;;  %v2305_v43 = vadd.f32 -1.0, %v2829_v22  ;;  %v1094_v44 = vmin.f32 %v3477_v16, 0.0  ;;  %v1058_v46 = vpop.f32.mrb[19].mxu0  ;;  %1425 = vmatmul.mubr.bf16.gmra.mrb[4].mxu1 %v1170_v38  ;;  %vm1076_vm1 = vcmp.gt.f32.partialorder %v3477_v16, 0.0 }
 0x186   : > { %v2833_v19 = vpop.eup %2832  ;;  %v2306_v59 = vadd.f32 -1.0, %v2831_v42  ;;  %v1095_v47 = vmin.f32 %v2541_v14, 0.0  ;;  %v1158_v50 = vsel %vm1068_vm8, %v3423_v31, %v2304_v40  ;;  %vm1077_vm0 = vcmp.gt.f32.partialorder %v2541_v14, 0.0 }
 0x187   : > { %v2307_v48 = vadd.f32 -1.0, %v2833_v19  ;;  %v1128_v49 = vmul.f32 1.442695, %v1094_v44  ;;  %v1159_v52 = vsel %vm1069_vm9, %v3427_v34, %v2305_v43 }
 0x188   : > { %v1130_v60 = vmul.f32 1.442695, %v1095_v47  ;;  %v1160_v51 = vsel %vm1070_vm10, %v3431_v39, %v2306_v59 }
 0x189   : > { %2842 = vpow2.f32 %v1128_v49  ;;  %v1161_v53 = vsel %vm1071_vm11, %v3435_v45, %v2307_v48  ;;  %v1172_v54 = vpack.c.bf16 %v1160_v51, %v1158_v50 }
 0x18a   : > { %2844 = vpow2.f32 %v1130_v60  ;;  %v1173_v57 = vpack.c.bf16 %v1161_v53, %v1159_v52 }
 0x18b   : > { %v2835_v61 = vpop.eup %2834 }
 0x18c   : > { %v2837_v63 = vpop.eup %2836  ;;  %v2308_v1 = vadd.f32 -1.0, %v2835_v61  ;;  %1434 = vmatprep.mubr.bf16.mxu1 %v1173_v57 }
 0x18d   : > { %v2839_v2 = vpop.eup %2838  ;;  %v2309_v0 = vadd.f32 -1.0, %v2837_v63  ;;  %1435 = vmatmul.mubr.bf16.gmra.mrb[8].mxu1 %v1172_v54 }
 0x18e   : > { %v2841_v5 = vpop.eup %2840  ;;  %v2310_v6 = vadd.f32 -1.0, %v2839_v2  ;;  %v1162_v34 = vsel %vm1072_vm12, %v3449_v4, %v2308_v1 }
 0x18f   : > { %v2311_v31 = vadd.f32 -1.0, %v2841_v5  ;;  %v1163_v45 = vsel %vm1073_vm14, %v3453_v62, %v2309_v0  ;;  %v2954_v62 = vmov 0  }
 0x190   : > { %v1164_v39 = vsel %vm1074_vm13, %v3457_v11, %v2310_v6 }
 0x191   : > { %v1165_v7 = vsel %vm1075_vm15, %v3462_v18, %v2311_v31  ;;  %v1174_v8 = vpack.c.bf16 %v1164_v39, %v1162_v34  ;;  %v1210_v18 = vld [vmem:[%s3793_s4] sm:$0x3] }
 0x192   : > { %v1175_v9 = vpack.c.bf16 %v1165_v7, %v1163_v45  ;;  %v3505_v20 = vrot.slane %v1210_v18, %v476_v56  ;;  %v3509_v21 = vrot.slane %v1210_v18, %v480_v58 }
 0x193   : > { %v2843_v10 = vpop.eup %2842 }
 0x194   : > { %v2845_v3 = vpop.eup %2844  ;;  %1444 = vmatprep.mubr.bf16.mxu1 %v1175_v9  ;;  %v2312_v12 = vadd.f32 -1.0, %v2843_v10 }
 0x195   : > { %1445 = vmatmul.mubr.bf16.gmra.mrb[12].mxu1 %v1174_v8  ;;  %v2313_v13 = vadd.f32 -1.0, %v2845_v3 }
 0x196   : > { %v1166_v4 = vsel %vm1076_vm1, %v3477_v16, %v2312_v12 }
 0x197   : > { %v1167_v15 = vsel %vm1077_vm0, %v2541_v14, %v2313_v13  ;;  %v1176_v11 = vpack.c.bf16 %v1166_v4, %v1166_v4 }
 0x198   : > { %v1177_v17 = vpack.c.bf16 %v1167_v15, %v1167_v15 }
 0x19a   : > { %1454 = vmatprep.mubr.bf16.mxu1 %v1177_v17 }
 0x19d   : > { %1455 = vmatmul.mubr.bf16.gmra.mrb[16].mxu1 %v1176_v11 }
 0x19e   : > { %1641 = vmatprep.mubr.bf16.mxu1 %v2954_v62 }
 0x250   : > { %v1416_v23 = vpop.f32.mrb[0].mxu1 }
 0x251   : > { %v1417_v24 = vadd.f32 %v1416_v23, %v3505_v20  ;;  %v1418_v25 = vpop.f32.mrb[1].mxu1 }
 0x252   : > { %v3513_v26 = vadd.f32 %v1418_v25, %v3509_v21  ;;  %v1420_v27 = vpop.f32.mrb[2].mxu1 }
 0x253   : > { %v1481_v28 = vmin.f32 %v1417_v24, 0.0  ;;  %v1421_v29 = vadd.f32 %v1420_v27, %v3505_v20  ;;  %v1422_v30 = vpop.f32.mrb[3].mxu1  ;;  %vm1463_vm2 = vcmp.gt.f32.partialorder %v1417_v24, 0.0 }
 0x254   : > { %v1482_v32 = vmin.f32 %v3513_v26, 0.0  ;;  %v3518_v56 = vadd.f32 %v1422_v30, %v3509_v21  ;;  %vm1464_vm3 = vcmp.gt.f32.partialorder %v3513_v26, 0.0 }
 0x255   : > { %v1499_v55 = vmul.f32 1.442695, %v1481_v28  ;;  %v1483_v58 = vmin.f32 %v1421_v29, 0.0  ;;  %vm1465_vm4 = vcmp.gt.f32.partialorder %v1421_v29, 0.0 }
 0x256   : > { %v1501_v33 = vmul.f32 1.442695, %v1482_v32  ;;  %v1484_v35 = vmin.f32 %v3518_v56, 0.0  ;;  %vm1466_vm5 = vcmp.gt.f32.partialorder %v3518_v56, 0.0 }
 0x257   : > { %2846 = vpow2.f32 %v1499_v55  ;;  %v1503_v36 = vmul.f32 1.442695, %v1483_v58 }
 0x258   : > { %2848 = vpow2.f32 %v1501_v33  ;;  %v1505_v16 = vmul.f32 1.442695, %v1484_v35  ;;  %v1426_v37 = vpop.f32.mrb[4].mxu1 }
 0x259   : > { %2850 = vpow2.f32 %v1503_v36  ;;  %v3522_v38 = vadd.f32 %v1426_v37, %v3505_v20  ;;  %v1428_v22 = vpop.f32.mrb[5].mxu1 }
 0x25a   : > { %2852 = vpow2.f32 %v1505_v16  ;;  %v3525_v40 = vadd.f32 %v1428_v22, %v3509_v21  ;;  %v1430_v14 = vpop.f32.mrb[6].mxu1 }
 0x25b   : > { %v1485_v41 = vmin.f32 %v3522_v38, 0.0  ;;  %v3529_v42 = vadd.f32 %v1430_v14, %v3505_v20  ;;  %v1432_v43 = vpop.f32.mrb[7].mxu1  ;;  %vm1467_vm6 = vcmp.gt.f32.partialorder %v3522_v38, 0.0 }
 0x25c   : > { %v1486_v44 = vmin.f32 %v3525_v40, 0.0  ;;  %v3533_v46 = vadd.f32 %v1432_v43, %v3509_v21  ;;  %vm1468_vm7 = vcmp.gt.f32.partialorder %v3525_v40, 0.0 }
 0x25d   : > { %v1507_v19 = vmul.f32 1.442695, %v1485_v41  ;;  %v1487_v59 = vmin.f32 %v3529_v42, 0.0  ;;  %vm1469_vm8 = vcmp.gt.f32.partialorder %v3529_v42, 0.0 }
 0x25e   : > { %v1509_v47 = vmul.f32 1.442695, %v1486_v44  ;;  %v1488_v48 = vmin.f32 %v3533_v46, 0.0  ;;  %vm1470_vm9 = vcmp.gt.f32.partialorder %v3533_v46, 0.0 }
 0x25f   : > { %2854 = vpow2.f32 %v1507_v19  ;;  %v1511_v49 = vmul.f32 1.442695, %v1487_v59 }
 0x260   : > { %2856 = vpow2.f32 %v1509_v47  ;;  %v1513_v60 = vmul.f32 1.442695, %v1488_v48  ;;  %v1436_v50 = vpop.f32.mrb[8].mxu1 }
 0x261   : > { %v2847_v51 = vpop.eup %2846  ;;  %2858 = vpow2.f32 %v1511_v49  ;;  %v3538_v52 = vadd.f32 %v1436_v50, %v3505_v20  ;;  %v1438_v53 = vpop.f32.mrb[9].mxu1 }
 0x262   : > { %v2849_v54 = vpop.eup %2848  ;;  %v2346_v57 = vadd.f32 -1.0, %v2847_v51  ;;  %2860 = vpow2.f32 %v1513_v60  ;;  %v3541_v61 = vadd.f32 %v1438_v53, %v3509_v21  ;;  %v1440_v63 = vpop.f32.mrb[10].mxu1 }
 0x263   : > { %v2851_v1 = vpop.eup %2850  ;;  %v2347_v2 = vadd.f32 -1.0, %v2849_v54  ;;  %v1489_v0 = vmin.f32 %v3538_v52, 0.0  ;;  %v3546_v5 = vadd.f32 %v1440_v63, %v3505_v20  ;;  %v1442_v6 = vpop.f32.mrb[11].mxu1  ;;  %vm1471_vm10 = vcmp.gt.f32.partialorder %v3538_v52, 0.0 }
 0x264   : > { %v2853_v31 = vpop.eup %2852  ;;  %v2348_v34 = vadd.f32 -1.0, %v2851_v1  ;;  %v1490_v39 = vmin.f32 %v3541_v61, 0.0  ;;  %v1553_v45 = vsel %vm1463_vm2, %v1417_v24, %v2346_v57  ;;  %v3553_v12 = vadd.f32 %v1442_v6, %v3509_v21 }
 0x265   : > { %v2349_v7 = vadd.f32 -1.0, %v2853_v31  ;;  %v1515_v8 = vmul.f32 1.442695, %v1489_v0  ;;  %v1491_v9 = vmin.f32 %v3546_v5, 0.0  ;;  %v1554_v13 = vsel %vm1464_vm3, %v3513_v26, %v2347_v2 }
 0x266   : > { %v1555_v10 = vsel %vm1465_vm4, %v1421_v29, %v2348_v34  ;;  %v1517_v3 = vmul.f32 1.442695, %v1490_v39  ;;  %v1492_v11 = vmin.f32 %v3553_v12, 0.0  ;;  %vm1473_vm11 = vcmp.gt.f32.partialorder %v3546_v5, 0.0 }
 0x267   : > { %v1575_v15 = vpack.c.bf16 %v1555_v10, %v1553_v45  ;;  %2862 = vpow2.f32 %v1515_v8  ;;  %v1519_v17 = vmul.f32 1.442695, %v1491_v9  ;;  %v1556_v4 = vsel %vm1466_vm5, %v3518_v56, %v2349_v7 }
 0x268   : > { %2864 = vpow2.f32 %v1517_v3  ;;  %v1446_v18 = vpop.f32.mrb[12].mxu1  ;;  %v1576_v23 = vpack.c.bf16 %v1556_v4, %v1554_v13  ;;  %v1521_v29 = vmul.f32 1.442695, %v1492_v11  ;;  %vm1472_vm12 = vcmp.gt.f32.partialorder %v3541_v61, 0.0 }
 0x269   : > { %v2855_v24 = vpop.eup %2854  ;;  %2866 = vpow2.f32 %v1519_v17  ;;  %v3561_v25 = vadd.f32 %v1446_v18, %v3505_v20  ;;  %v1448_v27 = vpop.f32.mrb[13].mxu1  ;;  %vm1474_vm13 = vcmp.gt.f32.partialorder %v3553_v12, 0.0  ;;  %vm1602_vm3 = vcmask 1043456  }
 0x26a   : > { %v2857_v28 = vpop.eup %2856  ;;  %v2350_v26 = vadd.f32 -1.0, %v2855_v24  ;;  %v3565_v30 = vadd.f32 %v1448_v27, %v3509_v21  ;;  %v1450_v32 = vpop.f32.mrb[14].mxu1  ;;  %1609 = vmatprep.subr.bf16.mxu1 %v1576_v23  ;;  %2868 = vpow2.f32 %v1521_v29  ;;  %vm1595_vm5 = vcmask 588800  }
 0x26b   : > { %v2859_v56 = vpop.eup %2858  ;;  %v2351_v55 = vadd.f32 -1.0, %v2857_v28  ;;  %v1493_v58 = vmin.f32 %v3561_v25, 0.0  ;;  %v3570_v33 = vadd.f32 %v1450_v32, %v3505_v20  ;;  %v1452_v35 = vpop.f32.mrb[15].mxu1  ;;  %1610 = vmatpush1.bf16.msra.mxu1 %v1575_v15  ;;  %vm1475_vm14 = vcmp.gt.f32.partialorder %v3561_v25, 0.0 }
 0x26c   : > { %v2861_v36 = vpop.eup %2860  ;;  %v2352_v16 = vadd.f32 -1.0, %v2859_v56  ;;  %v1557_v37 = vsel %vm1467_vm6, %v3522_v38, %v2350_v26  ;;  %v1494_v41 = vmin.f32 %v3565_v30, 0.0  ;;  %v3581_v19 = vadd.f32 %v1452_v35, %v3509_v21 }
 0x26d   : > { %v2353_v22 = vadd.f32 -1.0, %v2861_v36  ;;  %v1523_v14 = vmul.f32 1.442695, %v1493_v58  ;;  %v1495_v44 = vmin.f32 %v3570_v33, 0.0  ;;  %v1558_v59 = vsel %vm1468_vm7, %v3525_v40, %v2351_v55 }
 0x26e   : > { %v1559_v43 = vsel %vm1469_vm8, %v3529_v42, %v2352_v16  ;;  %v1525_v48 = vmul.f32 1.442695, %v1494_v41  ;;  %v1496_v60 = vmin.f32 %v3581_v19, 0.0  ;;  %vm1477_vm15 = vcmp.gt.f32.partialorder %v3570_v33, 0.0  ;;  %v2781_v41 = vld [vmem:[%s3795_s6 + $0x8] sm:$0xff]  }
 0x26f   : > { %v1577_v47 = vpack.c.bf16 %v1559_v43, %v1557_v37  ;;  %2870 = vpow2.f32 %v1523_v14  ;;  %v1560_v38 = vsel %vm1470_vm9, %v3533_v46, %v2353_v22  ;;  %v1527_v49 = vmul.f32 1.442695, %v1495_v44  ;;  %v2776_v37 = vld [vmem:[%s3794_s5] sm:$0xff]   ;;  %v2780_v14 = vld [vmem:[%s3795_s6 + $0x48] sm:$0xff]   ;;  %v2782_v43 = vld [vmem:[%s3795_s6 + $0x50] sm:$0xff]  }
 0x270   : > { %v1456_v50 = vpop.f32.mrb[16].mxu1  ;;  %v1578_v51 = vpack.c.bf16 %v1560_v38, %v1558_v59  ;;  %2872 = vpow2.f32 %v1525_v48  ;;  %v1529_v1 = vmul.f32 1.442695, %v1496_v60  ;;  %vm1476_vm0 = vcmp.gt.f32.partialorder %v3565_v30, 0.0  ;;  %v2779_v22 = vld [vmem:[%s3795_s6] sm:$0xff]   ;;  %v2777_v44 = vld [vmem:[%s3794_s5 + $0x8] sm:$0xff]  }
 0x271   : > { %v2863_v42 = vpop.eup %2862  ;;  %v1457_v53 = vadd.f32 %v1456_v50, %v3505_v20  ;;  %v1458_v54 = vpop.f32.mrb[17].mxu1  ;;  %2874 = vpow2.f32 %v1527_v49  ;;  %vm1478_vm1 = vcmp.gt.f32.partialorder %v3581_v19, 0.0  ;;  %v2785_v59 = vld [vmem:[%s3795_s6 + $0x18] sm:$0xff]   ;;  %v2787_v48 = vld [vmem:[%s3795_s6 + $0x20] sm:$0xff]   ;;  %v2788_v38 = vld [vmem:[%s3795_s6 + $0x68] sm:$0xff]   ;;  %vm2956_vm6 = vmmov 0  }
 0x272   : > { %v2865_v57 = vpop.eup %2864  ;;  %v2354_v63 = vadd.f32 -1.0, %v2863_v42  ;;  %v1459_v40 = vadd.f32 %v1458_v54, %v3509_v21  ;;  %v1460_v2 = vpop.f32.mrb[18].mxu1  ;;  %1611 = vmatprep.subr.bf16.mxu1 %v1578_v51  ;;  %2876 = vpow2.f32 %v1529_v1  ;;  %v2789_v49 = vld [vmem:[%s3795_s6 + $0x28] sm:$0xff]   ;;  %v2790_v60 = vld [vmem:[%s3795_s6 + $0x70] sm:$0xff]   ;;  %v2792_v51 = vld [vmem:[%s3795_s6 + $0x78] sm:$0xff]  }
 0x273   : > { %v2867_v0 = vpop.eup %2866  ;;  %v1497_v46 = vmin.f32 %v1457_v53, 0.0  ;;  %v1461_v6 = vpop.f32.mrb[19].mxu1  ;;  %1612 = vmatpush1.bf16.msra.mxu1 %v1577_v47  ;;  %v2355_v34 = vadd.f32 -1.0, %v2865_v57  ;;  %vm1479_vm2 = vcmp.gt.f32.partialorder %v1457_v53, 0.0  ;;  %v2786_v47 = vld [vmem:[%s3795_s6 + $0x60] sm:$0xff]   ;;  %v2791_v50 = vld [vmem:[%s3795_s6 + $0x30] sm:$0xff]  }
 0x274   : > { %v2356_v31 = vadd.f32 -1.0, %v2867_v0  ;;  %v1498_v39 = vmin.f32 %v1459_v40, 0.0  ;;  %v2869_v45 = vpop.eup %2868  ;;  %v1561_v7 = vsel %vm1471_vm10, %v3538_v52, %v2354_v63  ;;  %vm1480_vm4 = vcmp.gt.f32.partialorder %v1459_v40, 0.0  ;;  %v2793_v42 = vld [vmem:[%s3795_s6 + $0x38] sm:$0xff]  }
 0x275   : > { %v1531_v20 = vmul.f32 1.442695, %v1497_v46  ;;  %v2357_v9 = vadd.f32 -1.0, %v2869_v45  ;;  %v1562_v13 = vsel %vm1472_vm12, %v3541_v61, %v2355_v34  ;;  %v2796_v45 = vld [vmem:[%s3798_s9 + $0x48] sm:$0xff]  }
 0x276   : > { %v1563_v21 = vsel %vm1473_vm11, %v3546_v5, %v2356_v31  ;;  %v1533_v10 = vmul.f32 1.442695, %v1498_v39  ;;  %v2794_v39 = vld [vmem:[%s3798_s9 + $0x40] sm:$0xff]   ;;  %vm1877_vm11 = vcmask 261120  }
 0x277   : > { %v1579_v8 = vpack.c.bf16 %v1563_v21, %v1561_v7  ;;  %2878 = vpow2.f32 %v1531_v20  ;;  %v1564_v15 = vsel %vm1474_vm13, %v3553_v12, %v2357_v9  ;;  %v2955_v20 = vmov 0.0   ;;  %v2798_v7 = vld [vmem:[%s3798_s9 + $0x50] sm:$0xff]   ;;  %v2800_v21 = vld [vmem:[%s3798_s9 + $0x58] sm:$0xff]   ;;  %v2805_v9 = vld [vmem:[%s3798_s9 + $0x68] sm:$0xff]  }
 0x278   : > { %2880 = vpow2.f32 %v1533_v10  ;;  %v1580_v17 = vpack.c.bf16 %v1564_v15, %v1562_v13  ;;  %2484 = vmatprep.subr.bf16.mxu0 %v2955_v20  ;;  %2500 = vmatprep.mubr.msk.bf16.mxu0 %vm2956_vm6, %v2955_v20  ;;  %v2807_v10 = vld [vmem:[%s3798_s9 + $0x70] sm:$0xff]   ;;  %v2369_v13 = vld [vmem:[%s3796_s7] ss:$0 sm:$0xff] }
 0x279   : > { %v2871_v3 = vpop.eup %2870  ;;  %2485 = vmatpush3.bf16.msra.mxu0 %v2794_v39 }
 0x27a   : > { %v2873_v4 = vpop.eup %2872  ;;  %v2358_v11 = vadd.f32 -1.0, %v2871_v3  ;;  %1613 = vmatprep.subr.bf16.mxu1 %v1580_v17  ;;  %2486 = vmatprep.subr.bf16.mxu0 %v2955_v20 }
 0x27b   : > { %v2875_v52 = vpop.eup %2874  ;;  %v2359_v5 = vadd.f32 -1.0, %v2873_v4  ;;  %1614 = vmatpush1.bf16.msra.mxu1 %v1579_v8  ;;  %v2802_v8 = vld [vmem:[%s3798_s9 + $0x60] sm:$0xff]  }
 0x27c   : > { %v2360_v18 = vadd.f32 -1.0, %v2875_v52  ;;  %v2877_v23 = vpop.eup %2876  ;;  %v1565_v24 = vsel %vm1475_vm14, %v3561_v25, %v2358_v11 }
 0x27d   : > { %v2361_v61 = vadd.f32 -1.0, %v2877_v23  ;;  %v1566_v26 = vsel %vm1476_vm0, %v3565_v30, %v2359_v5  ;;  %v2778_v30 = vld [vmem:[%s3795_s6 + $0x40] sm:$0xff]   ;;  %2487 = vmatpush3.bf16.msra.mxu0 %v2796_v45 }
 0x27e   : > { %v1567_v27 = vsel %vm1477_vm15, %v3570_v33, %v2360_v18  ;;  %2488 = vmatprep.subr.bf16.mxu0 %v2955_v20  ;;  %v2135_v45 = vld [vmem:[%s3799_s10] sm:$0x1] }
 0x27f   : > { %v1581_v12 = vpack.c.bf16 %v1567_v27, %v1565_v24  ;;  %v1568_v29 = vsel %vm1478_vm1, %v3581_v19, %v2361_v61  ;;  %v2783_v19 = vld [vmem:[%s3795_s6 + $0x10] sm:$0xff]  }
 0x280   : > { %v1582_v56 = vpack.c.bf16 %v1568_v29, %v1566_v26 }
 0x281   : > { %v2879_v28 = vpop.eup %2878  ;;  %2489 = vmatpush3.bf16.msra.mxu0 %v2798_v7 }
 0x282   : > { %v2362_v32 = vadd.f32 -1.0, %v2879_v28  ;;  %v2881_v55 = vpop.eup %2880  ;;  %1615 = vmatprep.subr.bf16.mxu1 %v1582_v56  ;;  %2490 = vmatprep.subr.bf16.mxu0 %v2955_v20 }
 0x283   : > { %v2363_v35 = vadd.f32 -1.0, %v2881_v55  ;;  %1616 = vmatpush1.bf16.msra.mxu1 %v1581_v12 }
 0x284   : > { %v1569_v58 = vsel %vm1479_vm2, %v1457_v53, %v2362_v32 }
 0x285   : > { %v1583_v25 = vpack.c.bf16 %v1569_v58, %v1569_v58  ;;  %v1570_v33 = vsel %vm1480_vm4, %v1459_v40, %v2363_v35  ;;  %2491 = vmatpush3.bf16.msra.mxu0 %v2800_v21 }
 0x286   : > { %v1584_v36 = vpack.c.bf16 %v1570_v33, %v1570_v33  ;;  %2492 = vmatprep.subr.bf16.mxu0 %v2955_v20 }
 0x287   : > { %v1604_v16 = vsel %vm1602_vm3, %v1583_v25, 0 }
 0x288   : > { %2366 = vmatprep.subr.msk.bf16.mxu1 %vm1602_vm3, %v1584_v36 }
 0x289   : > { %1618 = vmatpush1.bf16.msra.mxu1 %v1604_v16  ;;  %2493 = vmatpush3.bf16.msra.mxu0 %v2802_v8 }
 0x28a   : > { %2427 = vmatprep.subr.bf16.mxu1 %v2778_v30  ;;  %2494 = vmatprep.subr.bf16.mxu0 %v2955_v20 }
 0x28c   : > { %2367 = vmatmul.mubr.msk.bf16.vlgmr.msra.gmra.mrb[20].mxu1 %vm1595_vm5, %v2776_v37 }
 0x28d   : > { %1651 = vmatprep.mubr.bf16.mxu1 %v2954_v62  ;;  %2428 = vmatpush3.bf16.msra.mxu1 %v2779_v22  ;;  %v2784_v62 = vld [vmem:[%s3795_s6 + $0x58] sm:$0xff]  }
 0x28e   : > { %2429 = vmatprep.subr.bf16.mxu1 %v2780_v14  ;;  %2495 = vmatpush3.bf16.msra.mxu0 %v2805_v9 }
 0x28f   : > { %2496 = vmatprep.subr.bf16.mxu0 %v2955_v20 }
 0x291   : > { %2430 = vmatpush3.bf16.msra.mxu1 %v2781_v41 }
 0x292   : > { %2431 = vmatprep.subr.bf16.mxu1 %v2782_v43  ;;  %2497 = vmatpush3.bf16.msra.mxu0 %v2807_v10 }
 0x293   : > { %2498 = vmatprep.subr.bf16.mxu0 %v2955_v20 }
 0x294   : > { %2368 = vmatmul.mubr.msk.bf16.gmra.mrb[24].mxu1 %vm1595_vm5, %v2777_v44 }
 0x295   : > { %2432 = vmatpush3.bf16.msra.mxu1 %v2783_v19 }
 0x296   : > { %2433 = vmatprep.subr.bf16.mxu1 %v2784_v62 }
 0x299   : > { %2434 = vmatpush3.bf16.msra.mxu1 %v2785_v59 }
 0x29a   : > { %2435 = vmatprep.subr.bf16.mxu1 %v2786_v47 }
 0x29d   : > { %2436 = vmatpush3.bf16.msra.mxu1 %v2787_v48 }
 0x29e   : > { %2437 = vmatprep.subr.bf16.mxu1 %v2788_v38 }
 0x2a1   : > { %2438 = vmatpush3.bf16.msra.mxu1 %v2789_v49  ;;  %v1874_v49 = vld [vmem:[%s3797_s8] sm:$0x1] }
 0x2a2   : > { %2439 = vmatprep.subr.bf16.mxu1 %v2790_v60  ;;  %v2795_v60 = vld [vmem:[%s3798_s9] sm:$0xff]  }
 0x2a5   : > { %2440 = vmatpush3.bf16.msra.mxu1 %v2791_v50  ;;  %v2797_v50 = vld [vmem:[%s3798_s9 + $0x8] sm:$0xff]  }
 0x2a6   : > { %2441 = vmatprep.subr.bf16.mxu1 %v2792_v51  ;;  %v2799_v51 = vld [vmem:[%s3798_s9 + $0x10] sm:$0xff]  }
 0x2a9   : > { %2442 = vmatpush3.bf16.msra.mxu1 %v2793_v42  ;;  %v2801_v42 = vld [vmem:[%s3798_s9 + $0x18] sm:$0xff]  }
 0x2aa   : > { %2476 = vmatprep.subr.bf16.mxu1 %v2955_v20 }
 0x35f   : > { %v1643_v53 = vpop.f32.mrb[20].mxu1 }
 0x360   : > { %v1645_v54 = vpop.f32.mrb[21].mxu1 }
 0x361   : > { %v1647_v57 = vpop.f32.mrb[22].mxu1 }
 0x362   : > { %v1662_v63 = vpack.c.bf16 %v1647_v57, %v1643_v53  ;;  %v1649_v1 = vpop.f32.mrb[23].mxu1  ;;  %v2803_v53 = vld [vmem:[%s3798_s9 + $0x20] sm:$0xff]   ;;  %v2806_v57 = vld [vmem:[%s3798_s9 + $0x30] sm:$0xff]  }
 0x363   : > { %v1663_v40 = vpack.c.bf16 %v1649_v1, %v1645_v54  ;;  %v2804_v54 = vld [vmem:[%s3798_s9 + $0x28] sm:$0xff]   ;;  %v2809_v1 = vld [vmem:[%s3798_s9 + $0x78] sm:$0xff]  }
 0x364   : > { %2499 = vmatpush3.bf16.msra.mxu0 %v2809_v1 }
 0x365   : > { %1833 = vmatprep.mubr.bf16.mxu1 %v1663_v40 }
 0x366   : > { %1834 = vmatmul.mubr.bf16.vlgmr.msra.gmra.mrb[28].mxu1 %v1662_v63  ;;  %v2808_v63 = vld [vmem:[%s3798_s9 + $0x38] sm:$0xff]  }
 0x367   : > { %v1653_v2 = vpop.f32.mrb[24].mxu1 }
 0x368   : > { %v1655_v0 = vpop.f32.mrb[25].mxu1 }
 0x369   : > { %v1657_v46 = vpop.f32.mrb[26].mxu1 }
 0x36a   : > { %v1664_v6 = vpack.c.bf16 %v1657_v46, %v1653_v2  ;;  %v1659_v31 = vpop.f32.mrb[27].mxu1 }
 0x36b   : > { %v1665_v34 = vpack.c.bf16 %v1659_v31, %v1655_v0 }
 0x36d   : > { %1841 = vmatprep.mubr.bf16.mxu1 %v1665_v34 }
 0x36e   : > { %1842 = vmatmul.mubr.bf16.gmra.mrb[32].mxu1 %v1664_v6 }
 0x36f   : > { %2480 = vmatprep.mubr.msk.bf16.mxu1 %vm2956_vm6, %v2955_v20 }
 0x439   : > { %v2443_v3 = vpop.f32.mrb[28].mxu1 }
 0x43a   : > { %v2444_v15 = vpop.f32.mrb[29].mxu1 }
 0x43b   : > { %v2445_v17 = vadd.f32 %v2444_v15, %v2443_v3  ;;  %v2446_v4 = vpop.f32.mrb[30].mxu1 }
 0x43c   : > { %v2447_v11 = vpop.f32.mrb[31].mxu1 }
 0x43d   : > { %v1836_v52 = vadd.f32 %v2445_v17, %v2369_v13  ;;  %v2448_v5 = vadd.f32 %v2447_v11, %v2446_v4 }
 0x43f   : > { %v1854_v18 = vmin.f32 %v1836_v52, 0.0  ;;  %v1839_v23 = vadd.f32 %v2448_v5, %v2369_v13  ;;  %vm1850_vm7 = vcmp.gt.f32.partialorder %v1836_v52, 0.0 }
 0x441   : > { %v1858_v24 = vmul.f32 1.442695, %v1854_v18  ;;  %v1855_v27 = vmin.f32 %v1839_v23, 0.0  ;;  %v2449_v61 = vpop.f32.mrb[32].mxu1  ;;  %vm1851_vm8 = vcmp.gt.f32.partialorder %v1839_v23, 0.0 }
 0x442   : > { %v2450_v12 = vpop.f32.mrb[33].mxu1 }
 0x443   : > { %2882 = vpow2.f32 %v1858_v24  ;;  %v1860_v28 = vmul.f32 1.442695, %v1855_v27  ;;  %v2451_v26 = vadd.f32 %v2450_v12, %v2449_v61  ;;  %v2452_v29 = vpop.f32.mrb[34].mxu1 }
 0x444   : > { %v2453_v32 = vpop.f32.mrb[35].mxu1 }
 0x445   : > { %2884 = vpow2.f32 %v1860_v28  ;;  %v1844_v56 = vadd.f32 %v2451_v26, %v2369_v13  ;;  %v2454_v55 = vadd.f32 %v2453_v32, %v2452_v29 }
 0x447   : > { %v1856_v58 = vmin.f32 %v1844_v56, 0.0  ;;  %v1847_v35 = vadd.f32 %v2454_v55, %v2369_v13  ;;  %vm1852_vm9 = vcmp.gt.f32.partialorder %v1844_v56, 0.0 }
 0x449   : > { %v1862_v25 = vmul.f32 1.442695, %v1856_v58  ;;  %v1857_v33 = vmin.f32 %v1847_v35, 0.0  ;;  %vm1853_vm10 = vcmp.gt.f32.partialorder %v1847_v35, 0.0 }
 0x44b   : > { %2886 = vpow2.f32 %v1862_v25  ;;  %v1864_v36 = vmul.f32 1.442695, %v1857_v33 }
 0x44d   : > { %v2883_v16 = vpop.eup %2882  ;;  %2888 = vpow2.f32 %v1864_v36 }
 0x44e   : > { %v2386_v30 = vadd.f32 -1.0, %v2883_v16 }
 0x44f   : > { %v2885_v37 = vpop.eup %2884 }
 0x450   : > { %v2387_v22 = vadd.f32 -1.0, %v2885_v37  ;;  %v1870_v14 = vsel %vm1850_vm7, %v1836_v52, %v2386_v30 }
 0x452   : > { %v1871_v41 = vsel %vm1851_vm8, %v1839_v23, %v2387_v22 }
 0x453   : > { %v1875_v43 = vpack.c.bf16 %v1871_v41, %v1870_v14 }
 0x455   : > { %v2887_v44 = vpop.eup %2886  ;;  %2477 = vmatpush3.bf16.msra.mxu1 %v1875_v43 }
 0x456   : > { %v2388_v19 = vadd.f32 -1.0, %v2887_v44  ;;  %2478 = vmatprep.subr.bf16.mxu1 %v2955_v20 }
 0x457   : > { %v2889_v62 = vpop.eup %2888 }
 0x458   : > { %v2389_v59 = vadd.f32 -1.0, %v2889_v62  ;;  %v1872_v47 = vsel %vm1852_vm9, %v1844_v56, %v2388_v19 }
 0x45a   : > { %v1873_v48 = vsel %vm1853_vm10, %v1847_v35, %v2389_v59 }
 0x45b   : > { %v1876_v38 = vpack.c.bf16 %v1873_v48, %v1872_v47 }
 0x45d   : > { %2479 = vmatpush3.bf16.msra.mxu1 %v1876_v38 }
 0x45e   : > { %2504 = vmatprep.subr.bf16.mxu1 %v2955_v20 }
 0x460   : > { %2481 = vmatmul.mubr.msk.bf16.vlgmr.msra.gmra.mrb[36].mxu1 %vm1877_vm11, %v1874_v49 }
 0x461   : > { %2505 = vmatpush3.bf16.msra.mxu1 %v2795_v60  ;;  %2520 = vmatprep.mubr.msk.bf16.mxu1 %vm2956_vm6, %v2955_v20 }
 0x462   : > { %2506 = vmatprep.subr.bf16.mxu1 %v2955_v20 }
 0x465   : > { %2507 = vmatpush3.bf16.msra.mxu1 %v2797_v50 }
 0x466   : > { %2508 = vmatprep.subr.bf16.mxu1 %v2955_v20 }
 0x469   : > { %2509 = vmatpush3.bf16.msra.mxu1 %v2799_v51 }
 0x46a   : > { %2510 = vmatprep.subr.bf16.mxu1 %v2955_v20 }
 0x46d   : > { %2511 = vmatpush3.bf16.msra.mxu1 %v2801_v42 }
 0x46e   : > { %2512 = vmatprep.subr.bf16.mxu1 %v2955_v20 }
 0x471   : > { %2513 = vmatpush3.bf16.msra.mxu1 %v2803_v53 }
 0x472   : > { %2514 = vmatprep.subr.bf16.mxu1 %v2955_v20 }
 0x475   : > { %2515 = vmatpush3.bf16.msra.mxu1 %v2804_v54 }
 0x476   : > { %2516 = vmatprep.subr.bf16.mxu1 %v2955_v20 }
 0x479   : > { %2517 = vmatpush3.bf16.msra.mxu1 %v2806_v57 }
 0x47a   : > { %2518 = vmatprep.subr.bf16.mxu1 %v2955_v20 }
 0x47d   : > { %2519 = vmatpush3.bf16.msra.mxu1 %v2808_v63 }
 0x533   : > { %v1915_v40 = vpop.f32.mrb[36].mxu1 }
 0x534   : > { %v1921_v2 = vpack.c.bf16 %v1915_v40, %v1915_v40  ;;  %v2482_v0 = vpop.f32.mrb[37].mxu1 }
 0x535   : > { %v1918_v46 = vpop.f32.mrb[38].mxu1 }
 0x536   : > { %v1956_v6 = vshrl.u32 %v1921_v2, 16  ;;  %v2483_v31 = vpop.f32.mrb[39].mxu1  ;;  %2521 = vmatmul.mubr.bf16.vlgmr.msra.gmra.mrb[40].mxu1 %v1921_v2 }
 0x538   : > { %2501 = vmatmul.mubr.bf16.vlgmr.msra.gmra.mrb[20].mxu0 %v1956_v6 }
 0x609   : > { %v2129_v34 = vpop.f32.mrb[40].mxu1 }
 0x60a   : > { %v2522_v20 = vpop.f32.mrb[41].mxu1 }
 0x60b   : > { %v2041_v39 = vpop.f32.mrb[20].mxu0  ;;  %v2132_v7 = vpop.f32.mrb[42].mxu1 }
 0x60c   : > { %v2130_v21 = vadd.f32 %v2129_v34, %v2041_v39  ;;  %v2502_v8 = vpop.f32.mrb[21].mxu0  ;;  %v2523_v9 = vpop.f32.mrb[43].mxu1 }
 0x60d   : > { %v2044_v10 = vpop.f32.mrb[22].mxu0 }
 0x60e   : > { %v2136_v3 = vadd.f32 %v2135_v45, %v2130_v21  ;;  %v2503_v13 = vpop.f32.mrb[23].mxu0 }
 0x610   : > { %2137 = vst [vmem:[%s381_s16] sm:$0x1] %v2136_v3 }
 0x611   : > { %2903 = shalt.err (!%p2900_p3)
}
 0x612   : > { %s2904_s15 = scalar_lea.hbm %s3747_s12, 16  ;;  %s2908_s25 = scalar_lea.hbm %s3800_s11, 32 }
 0x613   : > { %p2905_p4 = scmp.ne.s32.totalorder %s3747_s12, %s2904_s15  ;;  %p2909_p9 = scmp.lt.u32.totalorder %s3747_s12, %s3800_s11 }
 0x614   : > { %p2910_p10 = scmp.lt.u32.totalorder %s2908_s25, %s2904_s15  ;;  %p2912_p12 = scmp.lt.u32.totalorder %s2904_s15, %s3747_s12 }
 0x615   : > { %p2906_p7 = pnand %p2905_p4, %p3056_p5 }
 0x616   : > { %p2911_p11 = por %p2910_p10, %p2909_p9 }
 0x617   : > { %p2907_p8 = pneg %p2906_p7 }
 0x618   : > { %p2913_p13 = por %p2912_p12, %p2911_p11 }
 0x61a   : > { %p2914_p0 = pnand %p2913_p13, %p2907_p8 }
 0x61c   : > { %2917 = shalt.err (!%p2914_p0)
}
 0x61d   : > { %2562 = dma.vmem_to_hbm [thread:$0]  (%p3056_p5), %s3749_s22, 16, %s3747_s12, %s2139_s21  }
 0x61e PF: > { %p2568_p1 = scmp.ge.s32.totalorder %s2952_s20, 2  ;;  %s2163_s29 = sand.u32 1, %s2940_s17  }
 0x61f   : > { %s2164_s26 = scalar_lea.sflag [#allocation3], %s2163_s29 }
 0x620   : > { %p2565_p2 = pnand %p2568_p1, %p3060_p6 }
 0x622   : > { %2935 = dma.done.wait (!%p2565_p2), %s2164_s26, 16  }
 0x623   : > { %2937 = vsyncadd (!%p2565_p2), %s2164_s26, 4294967280  ;;  %s3804_s14 = sld [smem:[#allocation5_spill]]  ;;  %p21_p3 = scmp.ge.s32.totalorder %s3043_s23, 4  }
 0x624   : > { %s3805_s17 = smov %s2944_s18  ;;  %s3806_s18 = smov %s2948_s19 }
 0x625   : > { %s3808_s20 = smov %s3043_s23  ;;  %23 = sbr.rel (!%p21_p3) target bundleno = 3 (0x3), region = 100 }
 0x629   : > { %s3807_s19 = smov %s3804_s14 }
 0x62c   :  { %2168 = vsyncpa [#allocation3], 1 }
 0x62d   :  { %2170 = vsyncpa [#allocation3 + $0x1], 1 }

</bundles_post_ra>
